<compile_context>
chip_gen: v5e
topology: v5e:2x2
jax: 0.10.0
libtpu: 0.0.40
codegen_flags: <defaults>
</compile_context>

<pallas_src>
import functools

import jax
import jax.numpy as jnp
from jax.experimental import pallas as pl
from jax.experimental.pallas import tpu as pltpu


def _round_up(a, b):
    return ((a + b - 1) // b) * b


def _physical_vmem_bytes():
    """Per-core VMEM capacity; conservative 64 MiB (v7x) if it cannot be queried."""
    try:
        info = pltpu.get_tpu_info()
        for attr in ("vmem_capacity_bytes", "vmem_size_bytes", "vmem_bytes"):
            v = getattr(info, attr, None)
            if v:
                return int(v)
    except Exception:
        pass
    return 64 << 20


def _vmem_estimate(tile, x_dim, y_dim, h2, act_bytes, y_bytes, fuse_l2, weight_bufs):
    """Rough per-step VMEM bytes: double-buffered x/y streams + resident weights +
    live intermediates + accumulators."""
    cols1 = 2 * h2
    stream = 2 * tile * (x_dim * act_bytes + y_dim * y_bytes)          # x/y double buffers
    w2_elems = (2 * h2) * (2 * y_dim) if fuse_l2 else 2 * h2 * y_dim
    weights = weight_bufs * (x_dim * cols1 * act_bytes + cols1 * 4
                             + w2_elems * act_bytes + 2 * y_dim * 4)
    live = tile * (cols1 * (4 + act_bytes) + 10 * y_dim * 4)           # h, o2, mu/iv/products
    accs = 24 * y_dim * 4                                              # scratch + out blocks
    return stream + weights + live + accs


def _club_kernel(x_ref, y_ref, w1_ref, b1_ref, w2_ref, b2_ref, out_ref,
                 s1_ref, s2_ref, a_ref, b_ref, c_ref, d_ref,
                 *, n_rows, fuse_layer2):
    """One row-tile of the CLUB sufficient-statistics pass.

    x_ref : (T, x_dim)           activation tile (f32 or bf16)
    y_ref : (T, y_dim)
    w1_ref: (x_dim, 2*H2)        fused [W1_mu | W1_logvar]
    b1_ref: (1, 2*H2)
    w2_ref: (2*H2, 2*y_dim) block-diag, or (2, H2, y_dim) split
    b2_ref: (1, 2*y_dim)
    out_ref: (1, 6, y_dim)       per-split partial sums [S1,S2,A,B,C,D]
    s1..d_ref: (1, y_dim)        running per-feature accumulators (VMEM scratch)
    """
    c = pl.program_id(0)                   # row-split index ("parallel" -> one per core)
    i = pl.program_id(1)                   # tile index inside the split ("arbitrary")
    tiles_per_split = pl.num_programs(1)
    tile = x_ref.shape[0]
    y_dim = y_ref.shape[1]

    @pl.when(i == 0)
    def _init():
        zero = jnp.zeros((1, y_dim), jnp.float32)
        for r in (s1_ref, s2_ref, a_ref, b_ref, c_ref, d_ref):
            r[...] = zero

    # ---- approximation network q(y|x): both branches fused on the MXU ----
    x = x_ref[...]
    h = jnp.dot(x, w1_ref[...], preferred_element_type=jnp.float32) + b1_ref[...]
    h = jnp.maximum(h, 0.0).astype(w2_ref.dtype)        # bf16 feed for layer 2 when enabled
    if fuse_layer2:
        o2 = jnp.dot(h, w2_ref[...], preferred_element_type=jnp.float32) + b2_ref[...]
        mu, lv_pre = o2[:, :y_dim], o2[:, y_dim:]
    else:
        h2 = w2_ref.shape[1]
        mu = (jnp.dot(h[:, :h2], w2_ref[0], preferred_element_type=jnp.float32)
              + b2_ref[:, :y_dim])
        lv_pre = (jnp.dot(h[:, h2:], w2_ref[1], preferred_element_type=jnp.float32)
                  + b2_ref[:, y_dim:])
    inv_var = jnp.exp(-jnp.tanh(lv_pre))                 # 1/exp(logvar), EUP ops
    half_iv = 0.5 * inv_var
    iv_mu = inv_var * mu
    y = y_ref[...].astype(jnp.float32)

    # ---- per-feature sufficient statistics; column sums on the MXU, not the XLU ----
    ones_row = jnp.ones((1, tile), jnp.float32)

    def _accumulate(yv, hiv, ivmu):
        y2 = yv * yv
        terms = (yv, y2, hiv, ivmu, hiv * y2, ivmu * yv)
        refs = (s1_ref, s2_ref, a_ref, b_ref, c_ref, d_ref)
        if y_dim % 128 == 0:
            # lane-concat is free when y_dim is lane-aligned -> one reduction matmul
            stacked = jnp.concatenate(terms, axis=1)
            sums = jnp.dot(ones_row, stacked, preferred_element_type=jnp.float32)
            for k, r in enumerate(refs):
                r[...] += sums[:, k * y_dim:(k + 1) * y_dim]
        else:
            for v, r in zip(terms, refs):
                r[...] += jnp.dot(ones_row, v, preferred_element_type=jnp.float32)

    t = c * tiles_per_split + i                          # logical tile index
    row0 = t * tile
    is_full = row0 + tile <= n_rows

    @pl.when(is_full)                                    # fast path: no masking work
    def _full_tile():
        _accumulate(y, half_iv, iv_mu)

    @pl.when(jnp.logical_not(is_full))                   # at most one real partial tile
    def _partial_tile():
        rows = row0 + jax.lax.broadcasted_iota(jnp.int32, (tile, 1), 0)
        valid = rows < n_rows
        # Zero-mask via selects BEFORE any product / MXU reduction: padded rows hold
        # uninitialized VMEM (possibly NaN) and 0*NaN would poison the accumulators.
        _accumulate(jnp.where(valid, y, 0.0),
                    jnp.where(valid, half_iv, 0.0),
                    jnp.where(valid, iv_mu, 0.0))

    @pl.when(i == tiles_per_split - 1)
    def _finalize():
        for k, r in enumerate((s1_ref, s2_ref, a_ref, b_ref, c_ref, d_ref)):
            out_ref[:, k, :] = r[...]


def club_forward(x_samples, y_samples, params, *, tile_n=1024,
                 activation_dtype=jnp.bfloat16, y_dtype=jnp.float32,
                 num_row_splits=2, fuse_layer2=None, single_buffer_weights=True):
    """CLUB forward. Returns the scalar MI upper bound (matches the torch module)."""
    w1m, b1m, w2m, b2m, w1v, b1v, w2v, b2v = params
    n, x_dim = x_samples.shape
    y_dim = y_samples.shape[1]
    h2 = w1m.shape[1]

    act_dtype = jnp.dtype(activation_dtype)
    y_dt = jnp.dtype(y_dtype)

    # Block-diag layer-2 fusion only when a single branch is lane-sparse; otherwise
    # two dense per-branch matmuls halve layer-2 MXU work and W2's HBM/VMEM cost.
    if fuse_layer2 is None:
        fuse_layer2 = (2 * y_dim <= 256) and (h2 % 128 != 0)

    # Fuse per-branch weights (tiny one-off wrapper glue).
    w1c = jnp.concatenate([w1m, w1v], axis=1).astype(act_dtype)        # (x_dim, 2*H2)
    b1c = jnp.concatenate([b1m, b1v], axis=1).astype(jnp.float32)      # (1, 2*H2)
    if fuse_layer2:
        w2c = jnp.zeros((2 * h2, 2 * y_dim), jnp.float32)
        w2c = w2c.at[:h2, :y_dim].set(w2m).at[h2:, y_dim:].set(w2v)
        w2c = w2c.astype(act_dtype)                                    # (2*H2, 2*y_dim)
    else:
        w2c = jnp.stack([w2m, w2v], axis=0).astype(act_dtype)          # (2, H2, y_dim)
    b2c = jnp.concatenate([b2m, b2v], axis=1).astype(jnp.float32)      # (1, 2*y_dim)

    # Row tile: multiple of the bf16 sublane quantum (16 rows, also valid for f32),
    # clamped so double-buffered streams + weights + live values fit the VMEM budget.
    act_bytes = act_dtype.itemsize
    y_bytes = y_dt.itemsize
    budget = int(0.70 * _physical_vmem_bytes())            # 64 MiB assumed worst case (v7x)
    tile = min(int(tile_n), _round_up(n, 16))
    tile = max(16, _round_up(tile, 16))
    while tile > 16 and _vmem_estimate(tile, x_dim, y_dim, h2, act_bytes, y_bytes,
                                       fuse_layer2, 2) > budget:
        tile = max(16, _round_up(tile // 2, 16))
    num_tiles = pl.cdiv(n, tile)

    # Split the row axis across TensorCores (v7x has 2 per chip). Each split emits its
    # own partial sufficient statistics; the tiny combine happens below in plain JAX.
    n_splits = max(1, min(int(num_row_splits), num_tiles))
    tiles_per_split = pl.cdiv(num_tiles, n_splits)
    last_block = num_tiles - 1

    def xy_index(ci, ii):
        # Clamp so fully-out-of-range tiles of the last split re-read the last real
        # block (their rows are zero-masked in-kernel), keeping every DMA in bounds.
        return (jnp.minimum(ci * tiles_per_split + ii, last_block), 0)

    x_in = x_samples.astype(act_dtype)
    y_in = y_samples.astype(y_dt)

    kernel = functools.partial(_club_kernel, n_rows=n, fuse_layer2=fuse_layer2)

    def build(single_buffer):
        # Grid-invariant weights/biases don't need prefetch pipelining: single-buffer
        # them to halve their resident VMEM (matters on v7x 64 MiB / v5e scoped 16 MiB).
        w_kw = dict(pipeline_mode=pl.Buffered(1)) if single_buffer else {}
        if fuse_layer2:
            w2_spec = pl.BlockSpec((2 * h2, 2 * y_dim), lambda ci, ii: (0, 0), **w_kw)
        else:
            w2_spec = pl.BlockSpec((2, h2, y_dim), lambda ci, ii: (0, 0, 0), **w_kw)
        return pl.pallas_call(
            kernel,
            out_shape=jax.ShapeDtypeStruct((n_splits, 6, y_dim), jnp.float32),
            grid_spec=pltpu.PrefetchScalarGridSpec(
                num_scalar_prefetch=0,
                grid=(n_splits, tiles_per_split),
                in_specs=[
                    pl.BlockSpec((tile, x_dim), xy_index),                       # x tile
                    pl.BlockSpec((tile, y_dim), xy_index),                       # y tile
                    pl.BlockSpec((x_dim, 2 * h2), lambda ci, ii: (0, 0), **w_kw),  # W1 fused
                    pl.BlockSpec((1, 2 * h2), lambda ci, ii: (0, 0), **w_kw),      # b1 fused
                    w2_spec,                                                       # W2
                    pl.BlockSpec((1, 2 * y_dim), lambda ci, ii: (0, 0), **w_kw),   # b2 fused
                ],
                out_specs=pl.BlockSpec((1, 6, y_dim), lambda ci, ii: (ci, 0, 0)),
                scratch_shapes=[pltpu.VMEM((1, y_dim), jnp.float32)] * 6,
            ),
            compiler_params=pltpu.CompilerParams(
                dimension_semantics=("parallel", "arbitrary"),
                vmem_limit_bytes=budget),
        )

    if single_buffer_weights:
        try:
            partials = build(True)(x_in, y_in, w1c, b1c, w2c, b2c)
        except Exception:
            # pipeline_mode not supported by this jax version -> default double buffering.
            partials = build(False)(x_in, y_in, w1c, b1c, w2c, b2c)
    else:
        partials = build(False)(x_in, y_in, w1c, b1c, w2c, b2c)

    # Tiny finalize (combine per-split partials) in plain JAX:
    #   ub = (1/N) * [ sum_d E[y^2]*A - sum C + sum D - sum_d E[y]*B ]
    tot = partials.sum(axis=0)                              # (6, y_dim)
    s1, s2, a, b, c_, d = (tot[k] for k in range(6))
    inv_n = 1.0 / n
    ey, ey2 = s1 * inv_n, s2 * inv_n
    return (jnp.sum(ey2 * a) - jnp.sum(c_) + jnp.sum(d) - jnp.sum(ey * b)) * inv_n


def init_club_params(key, x_dim, y_dim, hidden_size):
    """Deterministic init mirroring nn.Linear defaults (uniform +-1/sqrt(fan_in))."""
    h2 = hidden_size // 2
    ks = jax.random.split(key, 8)

    def linear(kw, kb, fan_in, fan_out):
        bound = 1.0 / float(fan_in) ** 0.5
        w = jax.random.uniform(kw, (fan_in, fan_out), jnp.float32, -bound, bound)
        b = jax.random.uniform(kb, (1, fan_out), jnp.float32, -bound, bound)
        return w, b

    w1m, b1m = linear(ks[0], ks[1], x_dim, h2)
    w2m, b2m = linear(ks[2], ks[3], h2, y_dim)
    w1v, b1v = linear(ks[4], ks[5], x_dim, h2)
    w2v, b2v = linear(ks[6], ks[7], h2, y_dim)
    return w1m, b1m, w2m, b2m, w1v, b1v, w2v, b2v


def club_reference(x, y, params):
    """Literal JAX translation of the torch forward (O(N^2) pairwise negative)."""
    w1m, b1m, w2m, b2m, w1v, b1v, w2v, b2v = params
    mu = jnp.maximum(x @ w1m + b1m, 0.0) @ w2m + b2m
    logvar = jnp.tanh(jnp.maximum(x @ w1v + b1v, 0.0) @ w2v + b2v)
    positive = -(mu - y) ** 2 / 2.0 / jnp.exp(logvar)
    negative = -jnp.mean((y[None, :, :] - mu[:, None, :]) ** 2, axis=1) / 2.0 / jnp.exp(logvar)
    return jnp.mean(positive.sum(-1) - negative.sum(-1))


def club_reference_bf16(x, y, params):
    """Reference emulating the kernel's bf16-MXU path (x, W1, h, W2 fed in bf16)."""
    w1m, b1m, w2m, b2m, w1v, b1v, w2v, b2v = params
    bf = jnp.bfloat16

    def mlp(w1, b1, w2, b2):
        h = jnp.maximum(jnp.dot(x.astype(bf), w1.astype(bf),
                                preferred_element_type=jnp.float32) + b1, 0.0)
        return jnp.dot(h.astype(bf), w2.astype(bf),
                       preferred_element_type=jnp.float32) + b2

    mu = mlp(w1m, b1m, w2m, b2m)
    logvar = jnp.tanh(mlp(w1v, b1v, w2v, b2v))
    positive = -(mu - y) ** 2 / 2.0 / jnp.exp(logvar)
    negative = -jnp.mean((y[None, :, :] - mu[:, None, :]) ** 2, axis=1) / 2.0 / jnp.exp(logvar)
    return jnp.mean(positive.sum(-1) - negative.sum(-1))


if __name__ == "__main__":
    # Small shapes consistent with the module: batch=72, x_dim=16, y_dim=16, hidden=32.
    # tile_n=16 exercises: multi-tile grid, 2-way row split, the partial-tile masked
    # path, and a fully-padded (clamped) tile in the second split.
    N, X_DIM, Y_DIM, HIDDEN = 72, 16, 16, 32

    root = jax.random.PRNGKey(0)
    k_params, k_x, k_y = jax.random.split(root, 3)

    params = init_club_params(k_params, X_DIM, Y_DIM, HIDDEN)
    x = jax.random.normal(k_x, (N, X_DIM), jnp.float32)
    y = jax.random.normal(k_y, (N, Y_DIM), jnp.float32)

    # Exact f32 path: must match the literal O(N^2) reference tightly.
    result = club_forward(x, y, params, tile_n=16, activation_dtype=jnp.float32)
    jax.block_until_ready(result)
    ref = club_reference(x, y, params)
    assert jnp.allclose(result, ref, rtol=1e-4, atol=1e-4), (result, ref)

    # Default bf16-MXU path (v5e/v6e/v7x compute + bandwidth optimization): compare
    # against a reference that applies the same bf16 quantization to x/W1/h/W2.
    result_bf16 = club_forward(x, y, params, tile_n=16)
    jax.block_until_ready(result_bf16)
    ref_bf16 = club_reference_bf16(x, y, params)
    assert jnp.allclose(result_bf16, ref_bf16, rtol=2e-2, atol=2e-2), (result_bf16, ref_bf16)

    print("KERNEL_OK")
</pallas_src>

<mosaic_0001>
module attributes {stable_mosaic.version = 11 : i64} {
  func.func @_club_kernel(%arg0: i32, %arg1: i32, %arg2: memref<16x16xf32, #tpu.memory_space<vmem>>, %arg3: memref<16x16xf32, #tpu.memory_space<vmem>>, %arg4: memref<16x32xf32, #tpu.memory_space<vmem>>, %arg5: memref<1x32xf32, #tpu.memory_space<vmem>>, %arg6: memref<32x32xf32, #tpu.memory_space<vmem>>, %arg7: memref<1x32xf32, #tpu.memory_space<vmem>>, %arg8: memref<1x6x16xf32, #tpu.memory_space<vmem>>, %arg9: memref<1x16xf32, #tpu.memory_space<vmem>>, %arg10: memref<1x16xf32, #tpu.memory_space<vmem>>, %arg11: memref<1x16xf32, #tpu.memory_space<vmem>>, %arg12: memref<1x16xf32, #tpu.memory_space<vmem>>, %arg13: memref<1x16xf32, #tpu.memory_space<vmem>>, %arg14: memref<1x16xf32, #tpu.memory_space<vmem>>) attributes {dimension_semantics = [#tpu.dimension_semantics<parallel>, #tpu.dimension_semantics<arbitrary>], iteration_bounds = array<i64: 2, 3>, scalar_prefetch = 0 : i64, scratch_operands = 6 : i64, tpu.core_type = #tpu.core_type<tc>, window_params = [{transform_indices = @transform_0, window_bounds = array<i64: 16, 16>}, {transform_indices = @transform_1, window_bounds = array<i64: 16, 16>}, {pipeline_mode = #tpu.pipeline_mode<synchronous>, transform_indices = @transform_2, window_bounds = array<i64: 16, 32>}, {pipeline_mode = #tpu.pipeline_mode<synchronous>, transform_indices = @transform_3, window_bounds = array<i64: 1, 32>}, {pipeline_mode = #tpu.pipeline_mode<synchronous>, transform_indices = @transform_4, window_bounds = array<i64: 32, 32>}, {pipeline_mode = #tpu.pipeline_mode<synchronous>, transform_indices = @transform_5, window_bounds = array<i64: 1, 32>}, {transform_indices = @transform_6, window_bounds = array<i64: 1, 6, 16>}]} {
    %c0_i32 = arith.constant 0 : i32
    %0 = arith.cmpi eq, %arg1, %c0_i32 : i32
    %1 = arith.extui %0 : i1 to i32
    %c0_i32_0 = arith.constant 0 : i32
    %2 = arith.cmpi ne, %1, %c0_i32_0 : i32
    scf.if %2 {
      %cst_21 = arith.constant 0.000000e+00 : f32
      %40 = vector.broadcast %cst_21 : f32 to vector<1x16xf32>
      %c0_22 = arith.constant 0 : index
      %c0_23 = arith.constant 0 : index
      %41 = vector.load %arg9[%c0_22, %c0_23] : memref<1x16xf32, #tpu.memory_space<vmem>>, vector<1x16xf32>
      tpu.vector_store %arg9[%c0_22, %c0_23], %40 {strides = array<i32>} : memref<1x16xf32, #tpu.memory_space<vmem>>, vector<1x16xf32>,
      %c0_24 = arith.constant 0 : index
      %c0_25 = arith.constant 0 : index
      %42 = vector.load %arg10[%c0_24, %c0_25] : memref<1x16xf32, #tpu.memory_space<vmem>>, vector<1x16xf32>
      tpu.vector_store %arg10[%c0_24, %c0_25], %40 {strides = array<i32>} : memref<1x16xf32, #tpu.memory_space<vmem>>, vector<1x16xf32>,
      %c0_26 = arith.constant 0 : index
      %c0_27 = arith.constant 0 : index
      %43 = vector.load %arg11[%c0_26, %c0_27] : memref<1x16xf32, #tpu.memory_space<vmem>>, vector<1x16xf32>
      tpu.vector_store %arg11[%c0_26, %c0_27], %40 {strides = array<i32>} : memref<1x16xf32, #tpu.memory_space<vmem>>, vector<1x16xf32>,
      %c0_28 = arith.constant 0 : index
      %c0_29 = arith.constant 0 : index
      %44 = vector.load %arg12[%c0_28, %c0_29] : memref<1x16xf32, #tpu.memory_space<vmem>>, vector<1x16xf32>
      tpu.vector_store %arg12[%c0_28, %c0_29], %40 {strides = array<i32>} : memref<1x16xf32, #tpu.memory_space<vmem>>, vector<1x16xf32>,
      %c0_30 = arith.constant 0 : index
      %c0_31 = arith.constant 0 : index
      %45 = vector.load %arg13[%c0_30, %c0_31] : memref<1x16xf32, #tpu.memory_space<vmem>>, vector<1x16xf32>
      tpu.vector_store %arg13[%c0_30, %c0_31], %40 {strides = array<i32>} : memref<1x16xf32, #tpu.memory_space<vmem>>, vector<1x16xf32>,
      %c0_32 = arith.constant 0 : index
      %c0_33 = arith.constant 0 : index
      %46 = vector.load %arg14[%c0_32, %c0_33] : memref<1x16xf32, #tpu.memory_space<vmem>>, vector<1x16xf32>
      tpu.vector_store %arg14[%c0_32, %c0_33], %40 {strides = array<i32>} : memref<1x16xf32, #tpu.memory_space<vmem>>, vector<1x16xf32>,
    } else {
    }
    %c0 = arith.constant 0 : index
    %c0_1 = arith.constant 0 : index
    %3 = vector.load %arg2[%c0, %c0_1] : memref<16x16xf32, #tpu.memory_space<vmem>>, vector<16x16xf32>
    %c0_2 = arith.constant 0 : index
    %c0_3 = arith.constant 0 : index
    %4 = vector.load %arg4[%c0_2, %c0_3] : memref<16x32xf32, #tpu.memory_space<vmem>>, vector<16x32xf32>
    %cst = arith.constant dense<0.000000e+00> : vector<16x32xf32>
    %5 = tpu.matmul %3, %4, %cst {dimension_numbers = #tpu.dot_dimension_numbers<[1], [0], [0], [1], [0, 0, 1, 1], [], []>} : vector<16x16xf32>, vector<16x32xf32>, vector<16x32xf32> -> vector<16x32xf32>
    %c0_4 = arith.constant 0 : index
    %c0_5 = arith.constant 0 : index
    %6 = vector.load %arg5[%c0_4, %c0_5] : memref<1x32xf32, #tpu.memory_space<vmem>>, vector<1x32xf32>
    %7 = vector.broadcast %6 : vector<1x32xf32> to vector<16x32xf32>
    %8 = arith.addf %5, %7 : vector<16x32xf32>
    %cst_6 = arith.constant 0.000000e+00 : f32
    %9 = vector.broadcast %cst_6 : f32 to vector<16x32xf32>
    %10 = arith.maximumf %8, %9 : vector<16x32xf32>
    %c0_7 = arith.constant 0 : index
    %c0_8 = arith.constant 0 : index
    %11 = vector.load %arg6[%c0_7, %c0_8] : memref<32x32xf32, #tpu.memory_space<vmem>>, vector<32x32xf32>
    %cst_9 = arith.constant dense<0.000000e+00> : vector<16x32xf32>
    %12 = tpu.matmul %10, %11, %cst_9 {dimension_numbers = #tpu.dot_dimension_numbers<[1], [0], [0], [1], [0, 0, 1, 1], [], []>} : vector<16x32xf32>, vector<32x32xf32>, vector<16x32xf32> -> vector<16x32xf32>
    %c0_10 = arith.constant 0 : index
    %c0_11 = arith.constant 0 : index
    %13 = vector.load %arg7[%c0_10, %c0_11] : memref<1x32xf32, #tpu.memory_space<vmem>>, vector<1x32xf32>
    %14 = vector.broadcast %13 : vector<1x32xf32> to vector<16x32xf32>
    %15 = arith.addf %12, %14 : vector<16x32xf32>
    %16 = vector.extract_strided_slice %15 {offsets = [0, 0], sizes = [16, 16], strides = [1, 1]} : vector<16x32xf32> to vector<16x16xf32>
    %17 = vector.extract_strided_slice %15 {offsets = [0, 16], sizes = [16, 16], strides = [1, 1]} : vector<16x32xf32> to vector<16x16xf32>
    %18 = math.tanh %17 : vector<16x16xf32>
    %cst_12 = arith.constant 0.000000e+00 : f32
    %19 = vector.broadcast %cst_12 : f32 to vector<16x16xf32>
    %20 = arith.subf %19, %18 : vector<16x16xf32>
    %21 = math.exp %20 : vector<16x16xf32>
    %cst_13 = arith.constant 5.000000e-01 : f32
    %22 = vector.broadcast %cst_13 : f32 to vector<16x16xf32>
    %23 = arith.mulf %22, %21 : vector<16x16xf32>
    %24 = arith.mulf %21, %16 : vector<16x16xf32>
    %c0_14 = arith.constant 0 : index
    %c0_15 = arith.constant 0 : index
    %25 = vector.load %arg3[%c0_14, %c0_15] : memref<16x16xf32, #tpu.memory_space<vmem>>, vector<16x16xf32>
    %cst_16 = arith.constant 1.000000e+00 : f32
    %26 = vector.broadcast %cst_16 : f32 to vector<1x16xf32>
    %c3_i32 = arith.constant 3 : i32
    %27 = arith.muli %arg0, %c3_i32 : i32
    %28 = arith.addi %27, %arg1 : i32
    %c16_i32 = arith.constant 16 : i32
    %29 = arith.muli %28, %c16_i32 : i32
    %c16_i32_17 = arith.constant 16 : i32
    %30 = arith.addi %29, %c16_i32_17 : i32
    %c72_i32 = arith.constant 72 : i32
    %31 = arith.cmpi sle, %30, %c72_i32 : i32
    %32 = arith.extui %31 : i1 to i32
    %c0_i32_18 = arith.constant 0 : i32
    %33 = arith.cmpi ne, %32, %c0_i32_18 : i32
    scf.if %33 {
      %40 = arith.mulf %25, %25 : vector<16x16xf32>
      %41 = arith.mulf %23, %40 : vector<16x16xf32>
      %42 = arith.mulf %24, %25 : vector<16x16xf32>
      %c0_21 = arith.constant 0 : index
      %c0_22 = arith.constant 0 : index
      %43 = vector.load %arg9[%c0_21, %c0_22] : memref<1x16xf32, #tpu.memory_space<vmem>>, vector<1x16xf32>
      %cst_23 = arith.constant dense<0.000000e+00> : vector<1x16xf32>
      %44 = tpu.matmul %26, %25, %cst_23 {dimension_numbers = #tpu.dot_dimension_numbers<[1], [0], [0], [1], [0, 0, 1, 1], [], []>} : vector<1x16xf32>, vector<16x16xf32>, vector<1x16xf32> -> vector<1x16xf32>
      %45 = arith.addf %43, %44 : vector<1x16xf32>
      %c0_24 = arith.constant 0 : index
      %c0_25 = arith.constant 0 : index
      %46 = vector.load %arg9[%c0_24, %c0_25] : memref<1x16xf32, #tpu.memory_space<vmem>>, vector<1x16xf32>
      tpu.vector_store %arg9[%c0_24, %c0_25], %45 {strides = array<i32>} : memref<1x16xf32, #tpu.memory_space<vmem>>, vector<1x16xf32>,
      %c0_26 = arith.constant 0 : index
      %c0_27 = arith.constant 0 : index
      %47 = vector.load %arg10[%c0_26, %c0_27] : memref<1x16xf32, #tpu.memory_space<vmem>>, vector<1x16xf32>
      %cst_28 = arith.constant dense<0.000000e+00> : vector<1x16xf32>
      %48 = tpu.matmul %26, %40, %cst_28 {dimension_numbers = #tpu.dot_dimension_numbers<[1], [0], [0], [1], [0, 0, 1, 1], [], []>} : vector<1x16xf32>, vector<16x16xf32>, vector<1x16xf32> -> vector<1x16xf32>
      %49 = arith.addf %47, %48 : vector<1x16xf32>
      %c0_29 = arith.constant 0 : index
      %c0_30 = arith.constant 0 : index
      %50 = vector.load %arg10[%c0_29, %c0_30] : memref<1x16xf32, #tpu.memory_space<vmem>>, vector<1x16xf32>
      tpu.vector_store %arg10[%c0_29, %c0_30], %49 {strides = array<i32>} : memref<1x16xf32, #tpu.memory_space<vmem>>, vector<1x16xf32>,
      %c0_31 = arith.constant 0 : index
      %c0_32 = arith.constant 0 : index
      %51 = vector.load %arg11[%c0_31, %c0_32] : memref<1x16xf32, #tpu.memory_space<vmem>>, vector<1x16xf32>
      %cst_33 = arith.constant dense<0.000000e+00> : vector<1x16xf32>
      %52 = tpu.matmul %26, %23, %cst_33 {dimension_numbers = #tpu.dot_dimension_numbers<[1], [0], [0], [1], [0, 0, 1, 1], [], []>} : vector<1x16xf32>, vector<16x16xf32>, vector<1x16xf32> -> vector<1x16xf32>
      %53 = arith.addf %51, %52 : vector<1x16xf32>
      %c0_34 = arith.constant 0 : index
      %c0_35 = arith.constant 0 : index
      %54 = vector.load %arg11[%c0_34, %c0_35] : memref<1x16xf32, #tpu.memory_space<vmem>>, vector<1x16xf32>
      tpu.vector_store %arg11[%c0_34, %c0_35], %53 {strides = array<i32>} : memref<1x16xf32, #tpu.memory_space<vmem>>, vector<1x16xf32>,
      %c0_36 = arith.constant 0 : index
      %c0_37 = arith.constant 0 : index
      %55 = vector.load %arg12[%c0_36, %c0_37] : memref<1x16xf32, #tpu.memory_space<vmem>>, vector<1x16xf32>
      %cst_38 = arith.constant dense<0.000000e+00> : vector<1x16xf32>
      %56 = tpu.matmul %26, %24, %cst_38 {dimension_numbers = #tpu.dot_dimension_numbers<[1], [0], [0], [1], [0, 0, 1, 1], [], []>} : vector<1x16xf32>, vector<16x16xf32>, vector<1x16xf32> -> vector<1x16xf32>
      %57 = arith.addf %55, %56 : vector<1x16xf32>
      %c0_39 = arith.constant 0 : index
      %c0_40 = arith.constant 0 : index
      %58 = vector.load %arg12[%c0_39, %c0_40] : memref<1x16xf32, #tpu.memory_space<vmem>>, vector<1x16xf32>
      tpu.vector_store %arg12[%c0_39, %c0_40], %57 {strides = array<i32>} : memref<1x16xf32, #tpu.memory_space<vmem>>, vector<1x16xf32>,
      %c0_41 = arith.constant 0 : index
      %c0_42 = arith.constant 0 : index
      %59 = vector.load %arg13[%c0_41, %c0_42] : memref<1x16xf32, #tpu.memory_space<vmem>>, vector<1x16xf32>
      %cst_43 = arith.constant dense<0.000000e+00> : vector<1x16xf32>
      %60 = tpu.matmul %26, %41, %cst_43 {dimension_numbers = #tpu.dot_dimension_numbers<[1], [0], [0], [1], [0, 0, 1, 1], [], []>} : vector<1x16xf32>, vector<16x16xf32>, vector<1x16xf32> -> vector<1x16xf32>
      %61 = arith.addf %59, %60 : vector<1x16xf32>
      %c0_44 = arith.constant 0 : index
      %c0_45 = arith.constant 0 : index
      %62 = vector.load %arg13[%c0_44, %c0_45] : memref<1x16xf32, #tpu.memory_space<vmem>>, vector<1x16xf32>
      tpu.vector_store %arg13[%c0_44, %c0_45], %61 {strides = array<i32>} : memref<1x16xf32, #tpu.memory_space<vmem>>, vector<1x16xf32>,
      %c0_46 = arith.constant 0 : index
      %c0_47 = arith.constant 0 : index
      %63 = vector.load %arg14[%c0_46, %c0_47] : memref<1x16xf32, #tpu.memory_space<vmem>>, vector<1x16xf32>
      %cst_48 = arith.constant dense<0.000000e+00> : vector<1x16xf32>
      %64 = tpu.matmul %26, %42, %cst_48 {dimension_numbers = #tpu.dot_dimension_numbers<[1], [0], [0], [1], [0, 0, 1, 1], [], []>} : vector<1x16xf32>, vector<16x16xf32>, vector<1x16xf32> -> vector<1x16xf32>
      %65 = arith.addf %63, %64 : vector<1x16xf32>
      %c0_49 = arith.constant 0 : index
      %c0_50 = arith.constant 0 : index
      %66 = vector.load %arg14[%c0_49, %c0_50] : memref<1x16xf32, #tpu.memory_space<vmem>>, vector<1x16xf32>
      tpu.vector_store %arg14[%c0_49, %c0_50], %65 {strides = array<i32>} : memref<1x16xf32, #tpu.memory_space<vmem>>, vector<1x16xf32>,
    } else {
    }
    %true = arith.constant true
    %34 = arith.xori %31, %true : i1
    %35 = arith.extui %34 : i1 to i32
    %c0_i32_19 = arith.constant 0 : i32
    %36 = arith.cmpi ne, %35, %c0_i32_19 : i32
    scf.if %36 {
      %40 = tpu.iota {dimensions = array<i32: 0>} : vector<16x1xi32>
      %41 = vector.broadcast %29 : i32 to vector<16x1xi32>
      %42 = arith.addi %41, %40 : vector<16x1xi32>
      %c72_i32_21 = arith.constant 72 : i32
      %43 = vector.broadcast %c72_i32_21 : i32 to vector<16x1xi32>
      %44 = arith.cmpi slt, %42, %43 : vector<16x1xi32>
      %cst_22 = arith.constant 0.000000e+00 : f32
      %45 = vector.shape_cast %44 : vector<16x1xi1> to vector<16x1xi1>
      %46 = vector.broadcast %45 : vector<16x1xi1> to vector<16x16xi1>
      %47 = vector.broadcast %cst_22 : f32 to vector<16x16xf32>
      %48 = arith.select %46, %25, %47 : vector<16x16xi1>, vector<16x16xf32>
      %cst_23 = arith.constant 0.000000e+00 : f32
      %49 = vector.shape_cast %44 : vector<16x1xi1> to vector<16x1xi1>
      %50 = vector.broadcast %49 : vector<16x1xi1> to vector<16x16xi1>
      %51 = vector.broadcast %cst_23 : f32 to vector<16x16xf32>
      %52 = arith.select %50, %23, %51 : vector<16x16xi1>, vector<16x16xf32>
      %cst_24 = arith.constant 0.000000e+00 : f32
      %53 = vector.shape_cast %44 : vector<16x1xi1> to vector<16x1xi1>
      %54 = vector.broadcast %53 : vector<16x1xi1> to vector<16x16xi1>
      %55 = vector.broadcast %cst_24 : f32 to vector<16x16xf32>
      %56 = arith.select %54, %24, %55 : vector<16x16xi1>, vector<16x16xf32>
      %57 = arith.mulf %48, %48 : vector<16x16xf32>
      %58 = arith.mulf %52, %57 : vector<16x16xf32>
      %59 = arith.mulf %56, %48 : vector<16x16xf32>
      %c0_25 = arith.constant 0 : index
      %c0_26 = arith.constant 0 : index
      %60 = vector.load %arg9[%c0_25, %c0_26] : memref<1x16xf32, #tpu.memory_space<vmem>>, vector<1x16xf32>
      %cst_27 = arith.constant dense<0.000000e+00> : vector<1x16xf32>
      %61 = tpu.matmul %26, %48, %cst_27 {dimension_numbers = #tpu.dot_dimension_numbers<[1], [0], [0], [1], [0, 0, 1, 1], [], []>} : vector<1x16xf32>, vector<16x16xf32>, vector<1x16xf32> -> vector<1x16xf32>
      %62 = arith.addf %60, %61 : vector<1x16xf32>
      %c0_28 = arith.constant 0 : index
      %c0_29 = arith.constant 0 : index
      %63 = vector.load %arg9[%c0_28, %c0_29] : memref<1x16xf32, #tpu.memory_space<vmem>>, vector<1x16xf32>
      tpu.vector_store %arg9[%c0_28, %c0_29], %62 {strides = array<i32>} : memref<1x16xf32, #tpu.memory_space<vmem>>, vector<1x16xf32>,
      %c0_30 = arith.constant 0 : index
      %c0_31 = arith.constant 0 : index
      %64 = vector.load %arg10[%c0_30, %c0_31] : memref<1x16xf32, #tpu.memory_space<vmem>>, vector<1x16xf32>
      %cst_32 = arith.constant dense<0.000000e+00> : vector<1x16xf32>
      %65 = tpu.matmul %26, %57, %cst_32 {dimension_numbers = #tpu.dot_dimension_numbers<[1], [0], [0], [1], [0, 0, 1, 1], [], []>} : vector<1x16xf32>, vector<16x16xf32>, vector<1x16xf32> -> vector<1x16xf32>
      %66 = arith.addf %64, %65 : vector<1x16xf32>
      %c0_33 = arith.constant 0 : index
      %c0_34 = arith.constant 0 : index
      %67 = vector.load %arg10[%c0_33, %c0_34] : memref<1x16xf32, #tpu.memory_space<vmem>>, vector<1x16xf32>
      tpu.vector_store %arg10[%c0_33, %c0_34], %66 {strides = array<i32>} : memref<1x16xf32, #tpu.memory_space<vmem>>, vector<1x16xf32>,
      %c0_35 = arith.constant 0 : index
      %c0_36 = arith.constant 0 : index
      %68 = vector.load %arg11[%c0_35, %c0_36] : memref<1x16xf32, #tpu.memory_space<vmem>>, vector<1x16xf32>
      %cst_37 = arith.constant dense<0.000000e+00> : vector<1x16xf32>
      %69 = tpu.matmul %26, %52, %cst_37 {dimension_numbers = #tpu.dot_dimension_numbers<[1], [0], [0], [1], [0, 0, 1, 1], [], []>} : vector<1x16xf32>, vector<16x16xf32>, vector<1x16xf32> -> vector<1x16xf32>
      %70 = arith.addf %68, %69 : vector<1x16xf32>
      %c0_38 = arith.constant 0 : index
      %c0_39 = arith.constant 0 : index
      %71 = vector.load %arg11[%c0_38, %c0_39] : memref<1x16xf32, #tpu.memory_space<vmem>>, vector<1x16xf32>
      tpu.vector_store %arg11[%c0_38, %c0_39], %70 {strides = array<i32>} : memref<1x16xf32, #tpu.memory_space<vmem>>, vector<1x16xf32>,
      %c0_40 = arith.constant 0 : index
      %c0_41 = arith.constant 0 : index
      %72 = vector.load %arg12[%c0_40, %c0_41] : memref<1x16xf32, #tpu.memory_space<vmem>>, vector<1x16xf32>
      %cst_42 = arith.constant dense<0.000000e+00> : vector<1x16xf32>
      %73 = tpu.matmul %26, %56, %cst_42 {dimension_numbers = #tpu.dot_dimension_numbers<[1], [0], [0], [1], [0, 0, 1, 1], [], []>} : vector<1x16xf32>, vector<16x16xf32>, vector<1x16xf32> -> vector<1x16xf32>
      %74 = arith.addf %72, %73 : vector<1x16xf32>
      %c0_43 = arith.constant 0 : index
      %c0_44 = arith.constant 0 : index
      %75 = vector.load %arg12[%c0_43, %c0_44] : memref<1x16xf32, #tpu.memory_space<vmem>>, vector<1x16xf32>
      tpu.vector_store %arg12[%c0_43, %c0_44], %74 {strides = array<i32>} : memref<1x16xf32, #tpu.memory_space<vmem>>, vector<1x16xf32>,
      %c0_45 = arith.constant 0 : index
      %c0_46 = arith.constant 0 : index
      %76 = vector.load %arg13[%c0_45, %c0_46] : memref<1x16xf32, #tpu.memory_space<vmem>>, vector<1x16xf32>
      %cst_47 = arith.constant dense<0.000000e+00> : vector<1x16xf32>
      %77 = tpu.matmul %26, %58, %cst_47 {dimension_numbers = #tpu.dot_dimension_numbers<[1], [0], [0], [1], [0, 0, 1, 1], [], []>} : vector<1x16xf32>, vector<16x16xf32>, vector<1x16xf32> -> vector<1x16xf32>
      %78 = arith.addf %76, %77 : vector<1x16xf32>
      %c0_48 = arith.constant 0 : index
      %c0_49 = arith.constant 0 : index
      %79 = vector.load %arg13[%c0_48, %c0_49] : memref<1x16xf32, #tpu.memory_space<vmem>>, vector<1x16xf32>
      tpu.vector_store %arg13[%c0_48, %c0_49], %78 {strides = array<i32>} : memref<1x16xf32, #tpu.memory_space<vmem>>, vector<1x16xf32>,
      %c0_50 = arith.constant 0 : index
      %c0_51 = arith.constant 0 : index
      %80 = vector.load %arg14[%c0_50, %c0_51] : memref<1x16xf32, #tpu.memory_space<vmem>>, vector<1x16xf32>
      %cst_52 = arith.constant dense<0.000000e+00> : vector<1x16xf32>
      %81 = tpu.matmul %26, %59, %cst_52 {dimension_numbers = #tpu.dot_dimension_numbers<[1], [0], [0], [1], [0, 0, 1, 1], [], []>} : vector<1x16xf32>, vector<16x16xf32>, vector<1x16xf32> -> vector<1x16xf32>
      %82 = arith.addf %80, %81 : vector<1x16xf32>
      %c0_53 = arith.constant 0 : index
      %c0_54 = arith.constant 0 : index
      %83 = vector.load %arg14[%c0_53, %c0_54] : memref<1x16xf32, #tpu.memory_space<vmem>>, vector<1x16xf32>
      tpu.vector_store %arg14[%c0_53, %c0_54], %82 {strides = array<i32>} : memref<1x16xf32, #tpu.memory_space<vmem>>, vector<1x16xf32>,
    } else {
    }
    %c2_i32 = arith.constant 2 : i32
    %37 = arith.cmpi eq, %arg1, %c2_i32 : i32
    %38 = arith.extui %37 : i1 to i32
    %c0_i32_20 = arith.constant 0 : i32
    %39 = arith.cmpi ne, %38, %c0_i32_20 : i32
    scf.if %39 {
      %c0_21 = arith.constant 0 : index
      %c0_22 = arith.constant 0 : index
      %40 = vector.load %arg9[%c0_21, %c0_22] : memref<1x16xf32, #tpu.memory_space<vmem>>, vector<1x16xf32>
      %c0_23 = arith.constant 0 : index
      %c0_24 = arith.constant 0 : index
      %c0_25 = arith.constant 0 : index
      %41 = vector.load %arg8[%c0_23, %c0_24, %c0_25] : memref<1x6x16xf32, #tpu.memory_space<vmem>>, vector<1x1x16xf32>
      %42 = vector.shape_cast %41 : vector<1x1x16xf32> to vector<1x16xf32>
      %43 = vector.shape_cast %40 : vector<1x16xf32> to vector<1x1x16xf32>
      tpu.vector_store %arg8[%c0_23, %c0_24, %c0_25], %43 {strides = array<i32>} : memref<1x6x16xf32, #tpu.memory_space<vmem>>, vector<1x1x16xf32>,
      %c0_26 = arith.constant 0 : index
      %c0_27 = arith.constant 0 : index
      %44 = vector.load %arg10[%c0_26, %c0_27] : memref<1x16xf32, #tpu.memory_space<vmem>>, vector<1x16xf32>
      %c0_28 = arith.constant 0 : index
      %c1 = arith.constant 1 : index
      %c0_29 = arith.constant 0 : index
      %45 = vector.load %arg8[%c0_28, %c1, %c0_29] : memref<1x6x16xf32, #tpu.memory_space<vmem>>, vector<1x1x16xf32>
      %46 = vector.shape_cast %45 : vector<1x1x16xf32> to vector<1x16xf32>
      %47 = vector.shape_cast %44 : vector<1x16xf32> to vector<1x1x16xf32>
      tpu.vector_store %arg8[%c0_28, %c1, %c0_29], %47 {strides = array<i32>} : memref<1x6x16xf32, #tpu.memory_space<vmem>>, vector<1x1x16xf32>,
      %c0_30 = arith.constant 0 : index
      %c0_31 = arith.constant 0 : index
      %48 = vector.load %arg11[%c0_30, %c0_31] : memref<1x16xf32, #tpu.memory_space<vmem>>, vector<1x16xf32>
      %c0_32 = arith.constant 0 : index
      %c2 = arith.constant 2 : index
      %c0_33 = arith.constant 0 : index
      %49 = vector.load %arg8[%c0_32, %c2, %c0_33] : memref<1x6x16xf32, #tpu.memory_space<vmem>>, vector<1x1x16xf32>
      %50 = vector.shape_cast %49 : vector<1x1x16xf32> to vector<1x16xf32>
      %51 = vector.shape_cast %48 : vector<1x16xf32> to vector<1x1x16xf32>
      tpu.vector_store %arg8[%c0_32, %c2, %c0_33], %51 {strides = array<i32>} : memref<1x6x16xf32, #tpu.memory_space<vmem>>, vector<1x1x16xf32>,
      %c0_34 = arith.constant 0 : index
      %c0_35 = arith.constant 0 : index
      %52 = vector.load %arg12[%c0_34, %c0_35] : memref<1x16xf32, #tpu.memory_space<vmem>>, vector<1x16xf32>
      %c0_36 = arith.constant 0 : index
      %c3 = arith.constant 3 : index
      %c0_37 = arith.constant 0 : index
      %53 = vector.load %arg8[%c0_36, %c3, %c0_37] : memref<1x6x16xf32, #tpu.memory_space<vmem>>, vector<1x1x16xf32>
      %54 = vector.shape_cast %53 : vector<1x1x16xf32> to vector<1x16xf32>
      %55 = vector.shape_cast %52 : vector<1x16xf32> to vector<1x1x16xf32>
      tpu.vector_store %arg8[%c0_36, %c3, %c0_37], %55 {strides = array<i32>} : memref<1x6x16xf32, #tpu.memory_space<vmem>>, vector<1x1x16xf32>,
      %c0_38 = arith.constant 0 : index
      %c0_39 = arith.constant 0 : index
      %56 = vector.load %arg13[%c0_38, %c0_39] : memref<1x16xf32, #tpu.memory_space<vmem>>, vector<1x16xf32>
      %c0_40 = arith.constant 0 : index
      %c4 = arith.constant 4 : index
      %c0_41 = arith.constant 0 : index
      %57 = vector.load %arg8[%c0_40, %c4, %c0_41] : memref<1x6x16xf32, #tpu.memory_space<vmem>>, vector<1x1x16xf32>
      %58 = vector.shape_cast %57 : vector<1x1x16xf32> to vector<1x16xf32>
      %59 = vector.shape_cast %56 : vector<1x16xf32> to vector<1x1x16xf32>
      tpu.vector_store %arg8[%c0_40, %c4, %c0_41], %59 {strides = array<i32>} : memref<1x6x16xf32, #tpu.memory_space<vmem>>, vector<1x1x16xf32>,
      %c0_42 = arith.constant 0 : index
      %c0_43 = arith.constant 0 : index
      %60 = vector.load %arg14[%c0_42, %c0_43] : memref<1x16xf32, #tpu.memory_space<vmem>>, vector<1x16xf32>
      %c0_44 = arith.constant 0 : index
      %c5 = arith.constant 5 : index
      %c0_45 = arith.constant 0 : index
      %61 = vector.load %arg8[%c0_44, %c5, %c0_45] : memref<1x6x16xf32, #tpu.memory_space<vmem>>, vector<1x1x16xf32>
      %62 = vector.shape_cast %61 : vector<1x1x16xf32> to vector<1x16xf32>
      %63 = vector.shape_cast %60 : vector<1x16xf32> to vector<1x1x16xf32>
      tpu.vector_store %arg8[%c0_44, %c5, %c0_45], %63 {strides = array<i32>} : memref<1x6x16xf32, #tpu.memory_space<vmem>>, vector<1x1x16xf32>,
    } else {
    }
    return
  }
  func.func @transform_0(%arg0: i32, %arg1: i32) -> (i32, i32) {
    %c3_i32 = arith.constant 3 : i32
    %0 = arith.muli %arg0, %c3_i32 : i32
    %1 = arith.addi %0, %arg1 : i32
    %c4_i32 = arith.constant 4 : i32
    %2 = arith.minsi %1, %c4_i32 : i32
    %c0_i32 = arith.constant 0 : i32
    %c0_i32_0 = arith.constant 0 : i32
    return %2, %c0_i32 : i32, i32
  }
  func.func @transform_1(%arg0: i32, %arg1: i32) -> (i32, i32) {
    %c3_i32 = arith.constant 3 : i32
    %0 = arith.muli %arg0, %c3_i32 : i32
    %1 = arith.addi %0, %arg1 : i32
    %c4_i32 = arith.constant 4 : i32
    %2 = arith.minsi %1, %c4_i32 : i32
    %c0_i32 = arith.constant 0 : i32
    %c0_i32_0 = arith.constant 0 : i32
    return %2, %c0_i32 : i32, i32
  }
  func.func @transform_2(%arg0: i32, %arg1: i32) -> (i32, i32) {
    %c0_i32 = arith.constant 0 : i32
    %c0_i32_0 = arith.constant 0 : i32
    %c0_i32_1 = arith.constant 0 : i32
    return %c0_i32, %c0_i32_0 : i32, i32
  }
  func.func @transform_3(%arg0: i32, %arg1: i32) -> (i32, i32) {
    %c0_i32 = arith.constant 0 : i32
    %c0_i32_0 = arith.constant 0 : i32
    %c0_i32_1 = arith.constant 0 : i32
    return %c0_i32, %c0_i32_0 : i32, i32
  }
  func.func @transform_4(%arg0: i32, %arg1: i32) -> (i32, i32) {
    %c0_i32 = arith.constant 0 : i32
    %c0_i32_0 = arith.constant 0 : i32
    %c0_i32_1 = arith.constant 0 : i32
    return %c0_i32, %c0_i32_0 : i32, i32
  }
  func.func @transform_5(%arg0: i32, %arg1: i32) -> (i32, i32) {
    %c0_i32 = arith.constant 0 : i32
    %c0_i32_0 = arith.constant 0 : i32
    %c0_i32_1 = arith.constant 0 : i32
    return %c0_i32, %c0_i32_0 : i32, i32
  }
  func.func @transform_6(%arg0: i32, %arg1: i32) -> (i32, i32, i32) {
    %c0_i32 = arith.constant 0 : i32
    %c0_i32_0 = arith.constant 0 : i32
    %c0_i32_1 = arith.constant 0 : i32
    return %arg0, %c0_i32, %c0_i32_0 : i32, i32, i32
  }
}

module attributes {stable_mosaic.version = 11 : i64} {
  func.func @_club_kernel(%arg0: i32, %arg1: i32, %arg2: memref<16x16xf32, #tpu.memory_space<vmem>>, %arg3: memref<16x16xf32, #tpu.memory_space<vmem>>, %arg4: memref<16x32xf32, #tpu.memory_space<vmem>>, %arg5: memref<1x32xf32, #tpu.memory_space<vmem>>, %arg6: memref<32x32xf32, #tpu.memory_space<vmem>>, %arg7: memref<1x32xf32, #tpu.memory_space<vmem>>, %arg8: memref<1x6x16xf32, #tpu.memory_space<vmem>>, %arg9: memref<1x16xf32, #tpu.memory_space<vmem>>, %arg10: memref<1x16xf32, #tpu.memory_space<vmem>>, %arg11: memref<1x16xf32, #tpu.memory_space<vmem>>, %arg12: memref<1x16xf32, #tpu.memory_space<vmem>>, %arg13: memref<1x16xf32, #tpu.memory_space<vmem>>, %arg14: memref<1x16xf32, #tpu.memory_space<vmem>>) attributes {dimension_semantics = [#tpu.dimension_semantics<parallel>, #tpu.dimension_semantics<arbitrary>], iteration_bounds = array<i64: 2, 3>, scalar_prefetch = 0 : i64, scratch_operands = 6 : i64, tpu.core_type = #tpu.core_type<tc>, window_params = [{transform_indices = @transform_0, window_bounds = array<i64: 16, 16>}, {transform_indices = @transform_1, window_bounds = array<i64: 16, 16>}, {pipeline_mode = #tpu.pipeline_mode<synchronous>, transform_indices = @transform_2, window_bounds = array<i64: 16, 32>}, {pipeline_mode = #tpu.pipeline_mode<synchronous>, transform_indices = @transform_3, window_bounds = array<i64: 1, 32>}, {pipeline_mode = #tpu.pipeline_mode<synchronous>, transform_indices = @transform_4, window_bounds = array<i64: 32, 32>}, {pipeline_mode = #tpu.pipeline_mode<synchronous>, transform_indices = @transform_5, window_bounds = array<i64: 1, 32>}, {transform_indices = @transform_6, window_bounds = array<i64: 1, 6, 16>}]} {
    %c0_i32 = arith.constant 0 : i32
    %0 = arith.cmpi eq, %arg1, %c0_i32 : i32
    %1 = arith.extui %0 : i1 to i32
    %c0_i32_0 = arith.constant 0 : i32
    %2 = arith.cmpi ne, %1, %c0_i32_0 : i32
    scf.if %2 {
      %cst_21 = arith.constant 0.000000e+00 : f32
      %40 = vector.broadcast %cst_21 : f32 to vector<1x16xf32>
      %c0_22 = arith.constant 0 : index
      %c0_23 = arith.constant 0 : index
      %41 = vector.load %arg9[%c0_22, %c0_23] : memref<1x16xf32, #tpu.memory_space<vmem>>, vector<1x16xf32>
      tpu.vector_store %arg9[%c0_22, %c0_23], %40 {strides = array<i32>} : memref<1x16xf32, #tpu.memory_space<vmem>>, vector<1x16xf32>,
      %c0_24 = arith.constant 0 : index
      %c0_25 = arith.constant 0 : index
      %42 = vector.load %arg10[%c0_24, %c0_25] : memref<1x16xf32, #tpu.memory_space<vmem>>, vector<1x16xf32>
      tpu.vector_store %arg10[%c0_24, %c0_25], %40 {strides = array<i32>} : memref<1x16xf32, #tpu.memory_space<vmem>>, vector<1x16xf32>,
      %c0_26 = arith.constant 0 : index
      %c0_27 = arith.constant 0 : index
      %43 = vector.load %arg11[%c0_26, %c0_27] : memref<1x16xf32, #tpu.memory_space<vmem>>, vector<1x16xf32>
      tpu.vector_store %arg11[%c0_26, %c0_27], %40 {strides = array<i32>} : memref<1x16xf32, #tpu.memory_space<vmem>>, vector<1x16xf32>,
      %c0_28 = arith.constant 0 : index
      %c0_29 = arith.constant 0 : index
      %44 = vector.load %arg12[%c0_28, %c0_29] : memref<1x16xf32, #tpu.memory_space<vmem>>, vector<1x16xf32>
      tpu.vector_store %arg12[%c0_28, %c0_29], %40 {strides = array<i32>} : memref<1x16xf32, #tpu.memory_space<vmem>>, vector<1x16xf32>,
      %c0_30 = arith.constant 0 : index
      %c0_31 = arith.constant 0 : index
      %45 = vector.load %arg13[%c0_30, %c0_31] : memref<1x16xf32, #tpu.memory_space<vmem>>, vector<1x16xf32>
      tpu.vector_store %arg13[%c0_30, %c0_31], %40 {strides = array<i32>} : memref<1x16xf32, #tpu.memory_space<vmem>>, vector<1x16xf32>,
      %c0_32 = arith.constant 0 : index
      %c0_33 = arith.constant 0 : index
      %46 = vector.load %arg14[%c0_32, %c0_33] : memref<1x16xf32, #tpu.memory_space<vmem>>, vector<1x16xf32>
      tpu.vector_store %arg14[%c0_32, %c0_33], %40 {strides = array<i32>} : memref<1x16xf32, #tpu.memory_space<vmem>>, vector<1x16xf32>,
    } else {
    }
    %c0 = arith.constant 0 : index
    %c0_1 = arith.constant 0 : index
    %3 = vector.load %arg2[%c0, %c0_1] : memref<16x16xf32, #tpu.memory_space<vmem>>, vector<16x16xf32>
    %c0_2 = arith.constant 0 : index
    %c0_3 = arith.constant 0 : index
    %4 = vector.load %arg4[%c0_2, %c0_3] : memref<16x32xf32, #tpu.memory_space<vmem>>, vector<16x32xf32>
    %cst = arith.constant dense<0.000000e+00> : vector<16x32xf32>
    %5 = tpu.matmul %3, %4, %cst {dimension_numbers = #tpu.dot_dimension_numbers<[1], [0], [0], [1], [0, 0, 1, 1], [], []>} : vector<16x16xf32>, vector<16x32xf32>, vector<16x32xf32> -> vector<16x32xf32>
    %c0_4 = arith.constant 0 : index
    %c0_5 = arith.constant 0 : index
    %6 = vector.load %arg5[%c0_4, %c0_5] : memref<1x32xf32, #tpu.memory_space<vmem>>, vector<1x32xf32>
    %7 = vector.broadcast %6 : vector<1x32xf32> to vector<16x32xf32>
    %8 = arith.addf %5, %7 : vector<16x32xf32>
    %cst_6 = arith.constant 0.000000e+00 : f32
    %9 = vector.broadcast %cst_6 : f32 to vector<16x32xf32>
    %10 = arith.maximumf %8, %9 : vector<16x32xf32>
    %c0_7 = arith.constant 0 : index
    %c0_8 = arith.constant 0 : index
    %11 = vector.load %arg6[%c0_7, %c0_8] : memref<32x32xf32, #tpu.memory_space<vmem>>, vector<32x32xf32>
    %cst_9 = arith.constant dense<0.000000e+00> : vector<16x32xf32>
    %12 = tpu.matmul %10, %11, %cst_9 {dimension_numbers = #tpu.dot_dimension_numbers<[1], [0], [0], [1], [0, 0, 1, 1], [], []>} : vector<16x32xf32>, vector<32x32xf32>, vector<16x32xf32> -> vector<16x32xf32>
    %c0_10 = arith.constant 0 : index
    %c0_11 = arith.constant 0 : index
    %13 = vector.load %arg7[%c0_10, %c0_11] : memref<1x32xf32, #tpu.memory_space<vmem>>, vector<1x32xf32>
    %14 = vector.broadcast %13 : vector<1x32xf32> to vector<16x32xf32>
    %15 = arith.addf %12, %14 : vector<16x32xf32>
    %16 = vector.extract_strided_slice %15 {offsets = [0, 0], sizes = [16, 16], strides = [1, 1]} : vector<16x32xf32> to vector<16x16xf32>
    %17 = vector.extract_strided_slice %15 {offsets = [0, 16], sizes = [16, 16], strides = [1, 1]} : vector<16x32xf32> to vector<16x16xf32>
    %18 = math.tanh %17 : vector<16x16xf32>
    %cst_12 = arith.constant 0.000000e+00 : f32
    %19 = vector.broadcast %cst_12 : f32 to vector<16x16xf32>
    %20 = arith.subf %19, %18 : vector<16x16xf32>
    %21 = math.exp %20 : vector<16x16xf32>
    %cst_13 = arith.constant 5.000000e-01 : f32
    %22 = vector.broadcast %cst_13 : f32 to vector<16x16xf32>
    %23 = arith.mulf %22, %21 : vector<16x16xf32>
    %24 = arith.mulf %21, %16 : vector<16x16xf32>
    %c0_14 = arith.constant 0 : index
    %c0_15 = arith.constant 0 : index
    %25 = vector.load %arg3[%c0_14, %c0_15] : memref<16x16xf32, #tpu.memory_space<vmem>>, vector<16x16xf32>
    %cst_16 = arith.constant 1.000000e+00 : f32
    %26 = vector.broadcast %cst_16 : f32 to vector<1x16xf32>
    %c3_i32 = arith.constant 3 : i32
    %27 = arith.muli %arg0, %c3_i32 : i32
    %28 = arith.addi %27, %arg1 : i32
    %c16_i32 = arith.constant 16 : i32
    %29 = arith.muli %28, %c16_i32 : i32
    %c16_i32_17 = arith.constant 16 : i32
    %30 = arith.addi %29, %c16_i32_17 : i32
    %c72_i32 = arith.constant 72 : i32
    %31 = arith.cmpi sle, %30, %c72_i32 : i32
    %32 = arith.extui %31 : i1 to i32
    %c0_i32_18 = arith.constant 0 : i32
    %33 = arith.cmpi ne, %32, %c0_i32_18 : i32
    scf.if %33 {
      %40 = arith.mulf %25, %25 : vector<16x16xf32>
      %41 = arith.mulf %23, %40 : vector<16x16xf32>
      %42 = arith.mulf %24, %25 : vector<16x16xf32>
      %c0_21 = arith.constant 0 : index
      %c0_22 = arith.constant 0 : index
      %43 = vector.load %arg9[%c0_21, %c0_22] : memref<1x16xf32, #tpu.memory_space<vmem>>, vector<1x16xf32>
      %cst_23 = arith.constant dense<0.000000e+00> : vector<1x16xf32>
      %44 = tpu.matmul %26, %25, %cst_23 {dimension_numbers = #tpu.dot_dimension_numbers<[1], [0], [0], [1], [0, 0, 1, 1], [], []>} : vector<1x16xf32>, vector<16x16xf32>, vector<1x16xf32> -> vector<1x16xf32>
      %45 = arith.addf %43, %44 : vector<1x16xf32>
      %c0_24 = arith.constant 0 : index
      %c0_25 = arith.constant 0 : index
      %46 = vector.load %arg9[%c0_24, %c0_25] : memref<1x16xf32, #tpu.memory_space<vmem>>, vector<1x16xf32>
      tpu.vector_store %arg9[%c0_24, %c0_25], %45 {strides = array<i32>} : memref<1x16xf32, #tpu.memory_space<vmem>>, vector<1x16xf32>,
      %c0_26 = arith.constant 0 : index
      %c0_27 = arith.constant 0 : index
      %47 = vector.load %arg10[%c0_26, %c0_27] : memref<1x16xf32, #tpu.memory_space<vmem>>, vector<1x16xf32>
      %cst_28 = arith.constant dense<0.000000e+00> : vector<1x16xf32>
      %48 = tpu.matmul %26, %40, %cst_28 {dimension_numbers = #tpu.dot_dimension_numbers<[1], [0], [0], [1], [0, 0, 1, 1], [], []>} : vector<1x16xf32>, vector<16x16xf32>, vector<1x16xf32> -> vector<1x16xf32>
      %49 = arith.addf %47, %48 : vector<1x16xf32>
      %c0_29 = arith.constant 0 : index
      %c0_30 = arith.constant 0 : index
      %50 = vector.load %arg10[%c0_29, %c0_30] : memref<1x16xf32, #tpu.memory_space<vmem>>, vector<1x16xf32>
      tpu.vector_store %arg10[%c0_29, %c0_30], %49 {strides = array<i32>} : memref<1x16xf32, #tpu.memory_space<vmem>>, vector<1x16xf32>,
      %c0_31 = arith.constant 0 : index
      %c0_32 = arith.constant 0 : index
      %51 = vector.load %arg11[%c0_31, %c0_32] : memref<1x16xf32, #tpu.memory_space<vmem>>, vector<1x16xf32>
      %cst_33 = arith.constant dense<0.000000e+00> : vector<1x16xf32>
      %52 = tpu.matmul %26, %23, %cst_33 {dimension_numbers = #tpu.dot_dimension_numbers<[1], [0], [0], [1], [0, 0, 1, 1], [], []>} : vector<1x16xf32>, vector<16x16xf32>, vector<1x16xf32> -> vector<1x16xf32>
      %53 = arith.addf %51, %52 : vector<1x16xf32>
      %c0_34 = arith.constant 0 : index
      %c0_35 = arith.constant 0 : index
      %54 = vector.load %arg11[%c0_34, %c0_35] : memref<1x16xf32, #tpu.memory_space<vmem>>, vector<1x16xf32>
      tpu.vector_store %arg11[%c0_34, %c0_35], %53 {strides = array<i32>} : memref<1x16xf32, #tpu.memory_space<vmem>>, vector<1x16xf32>,
      %c0_36 = arith.constant 0 : index
      %c0_37 = arith.constant 0 : index
      %55 = vector.load %arg12[%c0_36, %c0_37] : memref<1x16xf32, #tpu.memory_space<vmem>>, vector<1x16xf32>
      %cst_38 = arith.constant dense<0.000000e+00> : vector<1x16xf32>
      %56 = tpu.matmul %26, %24, %cst_38 {dimension_numbers = #tpu.dot_dimension_numbers<[1], [0], [0], [1], [0, 0, 1, 1], [], []>} : vector<1x16xf32>, vector<16x16xf32>, vector<1x16xf32> -> vector<1x16xf32>
      %57 = arith.addf %55, %56 : vector<1x16xf32>
      %c0_39 = arith.constant 0 : index
      %c0_40 = arith.constant 0 : index
      %58 = vector.load %arg12[%c0_39, %c0_40] : memref<1x16xf32, #tpu.memory_space<vmem>>, vector<1x16xf32>
      tpu.vector_store %arg12[%c0_39, %c0_40], %57 {strides = array<i32>} : memref<1x16xf32, #tpu.memory_space<vmem>>, vector<1x16xf32>,
      %c0_41 = arith.constant 0 : index
      %c0_42 = arith.constant 0 : index
      %59 = vector.load %arg13[%c0_41, %c0_42] : memref<1x16xf32, #tpu.memory_space<vmem>>, vector<1x16xf32>
      %cst_43 = arith.constant dense<0.000000e+00> : vector<1x16xf32>
      %60 = tpu.matmul %26, %41, %cst_43 {dimension_numbers = #tpu.dot_dimension_numbers<[1], [0], [0], [1], [0, 0, 1, 1], [], []>} : vector<1x16xf32>, vector<16x16xf32>, vector<1x16xf32> -> vector<1x16xf32>
      %61 = arith.addf %59, %60 : vector<1x16xf32>
      %c0_44 = arith.constant 0 : index
      %c0_45 = arith.constant 0 : index
      %62 = vector.load %arg13[%c0_44, %c0_45] : memref<1x16xf32, #tpu.memory_space<vmem>>, vector<1x16xf32>
      tpu.vector_store %arg13[%c0_44, %c0_45], %61 {strides = array<i32>} : memref<1x16xf32, #tpu.memory_space<vmem>>, vector<1x16xf32>,
      %c0_46 = arith.constant 0 : index
      %c0_47 = arith.constant 0 : index
      %63 = vector.load %arg14[%c0_46, %c0_47] : memref<1x16xf32, #tpu.memory_space<vmem>>, vector<1x16xf32>
      %cst_48 = arith.constant dense<0.000000e+00> : vector<1x16xf32>
      %64 = tpu.matmul %26, %42, %cst_48 {dimension_numbers = #tpu.dot_dimension_numbers<[1], [0], [0], [1], [0, 0, 1, 1], [], []>} : vector<1x16xf32>, vector<16x16xf32>, vector<1x16xf32> -> vector<1x16xf32>
      %65 = arith.addf %63, %64 : vector<1x16xf32>
      %c0_49 = arith.constant 0 : index
      %c0_50 = arith.constant 0 : index
      %66 = vector.load %arg14[%c0_49, %c0_50] : memref<1x16xf32, #tpu.memory_space<vmem>>, vector<1x16xf32>
      tpu.vector_store %arg14[%c0_49, %c0_50], %65 {strides = array<i32>} : memref<1x16xf32, #tpu.memory_space<vmem>>, vector<1x16xf32>,
    } else {
    }
    %true = arith.constant true
    %34 = arith.xori %31, %true : i1
    %35 = arith.extui %34 : i1 to i32
    %c0_i32_19 = arith.constant 0 : i32
    %36 = arith.cmpi ne, %35, %c0_i32_19 : i32
    scf.if %36 {
      %40 = tpu.iota {dimensions = array<i32: 0>} : vector<16x1xi32>
      %41 = vector.broadcast %29 : i32 to vector<16x1xi32>
      %42 = arith.addi %41, %40 : vector<16x1xi32>
      %c72_i32_21 = arith.constant 72 : i32
      %43 = vector.broadcast %c72_i32_21 : i32 to vector<16x1xi32>
      %44 = arith.cmpi slt, %42, %43 : vector<16x1xi32>
      %cst_22 = arith.constant 0.000000e+00 : f32
      %45 = vector.shape_cast %44 : vector<16x1xi1> to vector<16x1xi1>
      %46 = vector.broadcast %45 : vector<16x1xi1> to vector<16x16xi1>
      %47 = vector.broadcast %cst_22 : f32 to vector<16x16xf32>
      %48 = arith.select %46, %25, %47 : vector<16x16xi1>, vector<16x16xf32>
      %cst_23 = arith.constant 0.000000e+00 : f32
      %49 = vector.shape_cast %44 : vector<16x1xi1> to vector<16x1xi1>
      %50 = vector.broadcast %49 : vector<16x1xi1> to vector<16x16xi1>
      %51 = vector.broadcast %cst_23 : f32 to vector<16x16xf32>
      %52 = arith.select %50, %23, %51 : vector<16x16xi1>, vector<16x16xf32>
      %cst_24 = arith.constant 0.000000e+00 : f32
      %53 = vector.shape_cast %44 : vector<16x1xi1> to vector<16x1xi1>
      %54 = vector.broadcast %53 : vector<16x1xi1> to vector<16x16xi1>
      %55 = vector.broadcast %cst_24 : f32 to vector<16x16xf32>
      %56 = arith.select %54, %24, %55 : vector<16x16xi1>, vector<16x16xf32>
      %57 = arith.mulf %48, %48 : vector<16x16xf32>
      %58 = arith.mulf %52, %57 : vector<16x16xf32>
      %59 = arith.mulf %56, %48 : vector<16x16xf32>
      %c0_25 = arith.constant 0 : index
      %c0_26 = arith.constant 0 : index
      %60 = vector.load %arg9[%c0_25, %c0_26] : memref<1x16xf32, #tpu.memory_space<vmem>>, vector<1x16xf32>
      %cst_27 = arith.constant dense<0.000000e+00> : vector<1x16xf32>
      %61 = tpu.matmul %26, %48, %cst_27 {dimension_numbers = #tpu.dot_dimension_numbers<[1], [0], [0], [1], [0, 0, 1, 1], [], []>} : vector<1x16xf32>, vector<16x16xf32>, vector<1x16xf32> -> vector<1x16xf32>
      %62 = arith.addf %60, %61 : vector<1x16xf32>
      %c0_28 = arith.constant 0 : index
      %c0_29 = arith.constant 0 : index
      %63 = vector.load %arg9[%c0_28, %c0_29] : memref<1x16xf32, #tpu.memory_space<vmem>>, vector<1x16xf32>
      tpu.vector_store %arg9[%c0_28, %c0_29], %62 {strides = array<i32>} : memref<1x16xf32, #tpu.memory_space<vmem>>, vector<1x16xf32>,
      %c0_30 = arith.constant 0 : index
      %c0_31 = arith.constant 0 : index
      %64 = vector.load %arg10[%c0_30, %c0_31] : memref<1x16xf32, #tpu.memory_space<vmem>>, vector<1x16xf32>
      %cst_32 = arith.constant dense<0.000000e+00> : vector<1x16xf32>
      %65 = tpu.matmul %26, %57, %cst_32 {dimension_numbers = #tpu.dot_dimension_numbers<[1], [0], [0], [1], [0, 0, 1, 1], [], []>} : vector<1x16xf32>, vector<16x16xf32>, vector<1x16xf32> -> vector<1x16xf32>
      %66 = arith.addf %64, %65 : vector<1x16xf32>
      %c0_33 = arith.constant 0 : index
      %c0_34 = arith.constant 0 : index
      %67 = vector.load %arg10[%c0_33, %c0_34] : memref<1x16xf32, #tpu.memory_space<vmem>>, vector<1x16xf32>
      tpu.vector_store %arg10[%c0_33, %c0_34], %66 {strides = array<i32>} : memref<1x16xf32, #tpu.memory_space<vmem>>, vector<1x16xf32>,
      %c0_35 = arith.constant 0 : index
      %c0_36 = arith.constant 0 : index
      %68 = vector.load %arg11[%c0_35, %c0_36] : memref<1x16xf32, #tpu.memory_space<vmem>>, vector<1x16xf32>
      %cst_37 = arith.constant dense<0.000000e+00> : vector<1x16xf32>
      %69 = tpu.matmul %26, %52, %cst_37 {dimension_numbers = #tpu.dot_dimension_numbers<[1], [0], [0], [1], [0, 0, 1, 1], [], []>} : vector<1x16xf32>, vector<16x16xf32>, vector<1x16xf32> -> vector<1x16xf32>
      %70 = arith.addf %68, %69 : vector<1x16xf32>
      %c0_38 = arith.constant 0 : index
      %c0_39 = arith.constant 0 : index
      %71 = vector.load %arg11[%c0_38, %c0_39] : memref<1x16xf32, #tpu.memory_space<vmem>>, vector<1x16xf32>
      tpu.vector_store %arg11[%c0_38, %c0_39], %70 {strides = array<i32>} : memref<1x16xf32, #tpu.memory_space<vmem>>, vector<1x16xf32>,
      %c0_40 = arith.constant 0 : index
      %c0_41 = arith.constant 0 : index
      %72 = vector.load %arg12[%c0_40, %c0_41] : memref<1x16xf32, #tpu.memory_space<vmem>>, vector<1x16xf32>
      %cst_42 = arith.constant dense<0.000000e+00> : vector<1x16xf32>
      %73 = tpu.matmul %26, %56, %cst_42 {dimension_numbers = #tpu.dot_dimension_numbers<[1], [0], [0], [1], [0, 0, 1, 1], [], []>} : vector<1x16xf32>, vector<16x16xf32>, vector<1x16xf32> -> vector<1x16xf32>
      %74 = arith.addf %72, %73 : vector<1x16xf32>
      %c0_43 = arith.constant 0 : index
      %c0_44 = arith.constant 0 : index
      %75 = vector.load %arg12[%c0_43, %c0_44] : memref<1x16xf32, #tpu.memory_space<vmem>>, vector<1x16xf32>
      tpu.vector_store %arg12[%c0_43, %c0_44], %74 {strides = array<i32>} : memref<1x16xf32, #tpu.memory_space<vmem>>, vector<1x16xf32>,
      %c0_45 = arith.constant 0 : index
      %c0_46 = arith.constant 0 : index
      %76 = vector.load %arg13[%c0_45, %c0_46] : memref<1x16xf32, #tpu.memory_space<vmem>>, vector<1x16xf32>
      %cst_47 = arith.constant dense<0.000000e+00> : vector<1x16xf32>
      %77 = tpu.matmul %26, %58, %cst_47 {dimension_numbers = #tpu.dot_dimension_numbers<[1], [0], [0], [1], [0, 0, 1, 1], [], []>} : vector<1x16xf32>, vector<16x16xf32>, vector<1x16xf32> -> vector<1x16xf32>
      %78 = arith.addf %76, %77 : vector<1x16xf32>
      %c0_48 = arith.constant 0 : index
      %c0_49 = arith.constant 0 : index
      %79 = vector.load %arg13[%c0_48, %c0_49] : memref<1x16xf32, #tpu.memory_space<vmem>>, vector<1x16xf32>
      tpu.vector_store %arg13[%c0_48, %c0_49], %78 {strides = array<i32>} : memref<1x16xf32, #tpu.memory_space<vmem>>, vector<1x16xf32>,
      %c0_50 = arith.constant 0 : index
      %c0_51 = arith.constant 0 : index
      %80 = vector.load %arg14[%c0_50, %c0_51] : memref<1x16xf32, #tpu.memory_space<vmem>>, vector<1x16xf32>
      %cst_52 = arith.constant dense<0.000000e+00> : vector<1x16xf32>
      %81 = tpu.matmul %26, %59, %cst_52 {dimension_numbers = #tpu.dot_dimension_numbers<[1], [0], [0], [1], [0, 0, 1, 1], [], []>} : vector<1x16xf32>, vector<16x16xf32>, vector<1x16xf32> -> vector<1x16xf32>
      %82 = arith.addf %80, %81 : vector<1x16xf32>
      %c0_53 = arith.constant 0 : index
      %c0_54 = arith.constant 0 : index
      %83 = vector.load %arg14[%c0_53, %c0_54] : memref<1x16xf32, #tpu.memory_space<vmem>>, vector<1x16xf32>
      tpu.vector_store %arg14[%c0_53, %c0_54], %82 {strides = array<i32>} : memref<1x16xf32, #tpu.memory_space<vmem>>, vector<1x16xf32>,
    } else {
    }
    %c2_i32 = arith.constant 2 : i32
    %37 = arith.cmpi eq, %arg1, %c2_i32 : i32
    %38 = arith.extui %37 : i1 to i32
    %c0_i32_20 = arith.constant 0 : i32
    %39 = arith.cmpi ne, %38, %c0_i32_20 : i32
    scf.if %39 {
      %c0_21 = arith.constant 0 : index
      %c0_22 = arith.constant 0 : index
      %40 = vector.load %arg9[%c0_21, %c0_22] : memref<1x16xf32, #tpu.memory_space<vmem>>, vector<1x16xf32>
      %c0_23 = arith.constant 0 : index
      %c0_24 = arith.constant 0 : index
      %c0_25 = arith.constant 0 : index
      %41 = vector.load %arg8[%c0_23, %c0_24, %c0_25] : memref<1x6x16xf32, #tpu.memory_space<vmem>>, vector<1x1x16xf32>
      %42 = vector.shape_cast %41 : vector<1x1x16xf32> to vector<1x16xf32>
      %43 = vector.shape_cast %40 : vector<1x16xf32> to vector<1x1x16xf32>
      tpu.vector_store %arg8[%c0_23, %c0_24, %c0_25], %43 {strides = array<i32>} : memref<1x6x16xf32, #tpu.memory_space<vmem>>, vector<1x1x16xf32>,
      %c0_26 = arith.constant 0 : index
      %c0_27 = arith.constant 0 : index
      %44 = vector.load %arg10[%c0_26, %c0_27] : memref<1x16xf32, #tpu.memory_space<vmem>>, vector<1x16xf32>
      %c0_28 = arith.constant 0 : index
      %c1 = arith.constant 1 : index
      %c0_29 = arith.constant 0 : index
      %45 = vector.load %arg8[%c0_28, %c1, %c0_29] : memref<1x6x16xf32, #tpu.memory_space<vmem>>, vector<1x1x16xf32>
      %46 = vector.shape_cast %45 : vector<1x1x16xf32> to vector<1x16xf32>
      %47 = vector.shape_cast %44 : vector<1x16xf32> to vector<1x1x16xf32>
      tpu.vector_store %arg8[%c0_28, %c1, %c0_29], %47 {strides = array<i32>} : memref<1x6x16xf32, #tpu.memory_space<vmem>>, vector<1x1x16xf32>,
      %c0_30 = arith.constant 0 : index
      %c0_31 = arith.constant 0 : index
      %48 = vector.load %arg11[%c0_30, %c0_31] : memref<1x16xf32, #tpu.memory_space<vmem>>, vector<1x16xf32>
      %c0_32 = arith.constant 0 : index
      %c2 = arith.constant 2 : index
      %c0_33 = arith.constant 0 : index
      %49 = vector.load %arg8[%c0_32, %c2, %c0_33] : memref<1x6x16xf32, #tpu.memory_space<vmem>>, vector<1x1x16xf32>
      %50 = vector.shape_cast %49 : vector<1x1x16xf32> to vector<1x16xf32>
      %51 = vector.shape_cast %48 : vector<1x16xf32> to vector<1x1x16xf32>
      tpu.vector_store %arg8[%c0_32, %c2, %c0_33], %51 {strides = array<i32>} : memref<1x6x16xf32, #tpu.memory_space<vmem>>, vector<1x1x16xf32>,
      %c0_34 = arith.constant 0 : index
      %c0_35 = arith.constant 0 : index
      %52 = vector.load %arg12[%c0_34, %c0_35] : memref<1x16xf32, #tpu.memory_space<vmem>>, vector<1x16xf32>
      %c0_36 = arith.constant 0 : index
      %c3 = arith.constant 3 : index
      %c0_37 = arith.constant 0 : index
      %53 = vector.load %arg8[%c0_36, %c3, %c0_37] : memref<1x6x16xf32, #tpu.memory_space<vmem>>, vector<1x1x16xf32>
      %54 = vector.shape_cast %53 : vector<1x1x16xf32> to vector<1x16xf32>
      %55 = vector.shape_cast %52 : vector<1x16xf32> to vector<1x1x16xf32>
      tpu.vector_store %arg8[%c0_36, %c3, %c0_37], %55 {strides = array<i32>} : memref<1x6x16xf32, #tpu.memory_space<vmem>>, vector<1x1x16xf32>,
      %c0_38 = arith.constant 0 : index
      %c0_39 = arith.constant 0 : index
      %56 = vector.load %arg13[%c0_38, %c0_39] : memref<1x16xf32, #tpu.memory_space<vmem>>, vector<1x16xf32>
      %c0_40 = arith.constant 0 : index
      %c4 = arith.constant 4 : index
      %c0_41 = arith.constant 0 : index
      %57 = vector.load %arg8[%c0_40, %c4, %c0_41] : memref<1x6x16xf32, #tpu.memory_space<vmem>>, vector<1x1x16xf32>
      %58 = vector.shape_cast %57 : vector<1x1x16xf32> to vector<1x16xf32>
      %59 = vector.shape_cast %56 : vector<1x16xf32> to vector<1x1x16xf32>
      tpu.vector_store %arg8[%c0_40, %c4, %c0_41], %59 {strides = array<i32>} : memref<1x6x16xf32, #tpu.memory_space<vmem>>, vector<1x1x16xf32>,
      %c0_42 = arith.constant 0 : index
      %c0_43 = arith.constant 0 : index
      %60 = vector.load %arg14[%c0_42, %c0_43] : memref<1x16xf32, #tpu.memory_space<vmem>>, vector<1x16xf32>
      %c0_44 = arith.constant 0 : index
      %c5 = arith.constant 5 : index
      %c0_45 = arith.constant 0 : index
      %61 = vector.load %arg8[%c0_44, %c5, %c0_45] : memref<1x6x16xf32, #tpu.memory_space<vmem>>, vector<1x1x16xf32>
      %62 = vector.shape_cast %61 : vector<1x1x16xf32> to vector<1x16xf32>
      %63 = vector.shape_cast %60 : vector<1x16xf32> to vector<1x1x16xf32>
      tpu.vector_store %arg8[%c0_44, %c5, %c0_45], %63 {strides = array<i32>} : memref<1x6x16xf32, #tpu.memory_space<vmem>>, vector<1x1x16xf32>,
    } else {
    }
    return
  }
  func.func @transform_0(%arg0: i32, %arg1: i32) -> (i32, i32) {
    %c3_i32 = arith.constant 3 : i32
    %0 = arith.muli %arg0, %c3_i32 : i32
    %1 = arith.addi %0, %arg1 : i32
    %c4_i32 = arith.constant 4 : i32
    %2 = arith.minsi %1, %c4_i32 : i32
    %c0_i32 = arith.constant 0 : i32
    %c0_i32_0 = arith.constant 0 : i32
    return %2, %c0_i32 : i32, i32
  }
  func.func @transform_1(%arg0: i32, %arg1: i32) -> (i32, i32) {
    %c3_i32 = arith.constant 3 : i32
    %0 = arith.muli %arg0, %c3_i32 : i32
    %1 = arith.addi %0, %arg1 : i32
    %c4_i32 = arith.constant 4 : i32
    %2 = arith.minsi %1, %c4_i32 : i32
    %c0_i32 = arith.constant 0 : i32
    %c0_i32_0 = arith.constant 0 : i32
    return %2, %c0_i32 : i32, i32
  }
  func.func @transform_2(%arg0: i32, %arg1: i32) -> (i32, i32) {
    %c0_i32 = arith.constant 0 : i32
    %c0_i32_0 = arith.constant 0 : i32
    %c0_i32_1 = arith.constant 0 : i32
    return %c0_i32, %c0_i32_0 : i32, i32
  }
  func.func @transform_3(%arg0: i32, %arg1: i32) -> (i32, i32) {
    %c0_i32 = arith.constant 0 : i32
    %c0_i32_0 = arith.constant 0 : i32
    %c0_i32_1 = arith.constant 0 : i32
    return %c0_i32, %c0_i32_0 : i32, i32
  }
  func.func @transform_4(%arg0: i32, %arg1: i32) -> (i32, i32) {
    %c0_i32 = arith.constant 0 : i32
    %c0_i32_0 = arith.constant 0 : i32
    %c0_i32_1 = arith.constant 0 : i32
    return %c0_i32, %c0_i32_0 : i32, i32
  }
  func.func @transform_5(%arg0: i32, %arg1: i32) -> (i32, i32) {
    %c0_i32 = arith.constant 0 : i32
    %c0_i32_0 = arith.constant 0 : i32
    %c0_i32_1 = arith.constant 0 : i32
    return %c0_i32, %c0_i32_0 : i32, i32
  }
  func.func @transform_6(%arg0: i32, %arg1: i32) -> (i32, i32, i32) {
    %c0_i32 = arith.constant 0 : i32
    %c0_i32_0 = arith.constant 0 : i32
    %c0_i32_1 = arith.constant 0 : i32
    return %arg0, %c0_i32, %c0_i32_0 : i32, i32, i32
  }
}

</mosaic_0001>

<bundles_post_ra>
// kernel: tpu_custom_call.1
= control target key start
LH: loop header
LB: loop body
LE: loop exit
PB: predicated region body
PF: predicated region fallthrough
CT: control target
= control target key end

     0   :  { %s1230_s21 = smov 0   ;;  %s1232_s22 = smov 0   ;;  %s1404_s0 = inlined_call_operand.vmem [shape: f32[72,16], index: 0, kind: input, shape index: {}]   ;;  %s1405_s1 = inlined_call_operand.vmem [shape: f32[72,16], index: 1, kind: input, shape index: {}]   ;;  %s1406_s2 = inlined_call_operand.vmem [shape: f32[16,32], index: 2, kind: input, shape index: {}]   ;;  %s1407_s3 = inlined_call_operand.vmem [shape: f32[1,32], index: 3, kind: input, shape index: {}]   ;;  %s1408_s4 = inlined_call_operand.vmem [shape: f32[32,32], index: 4, kind: input, shape index: {}]   ;;  %s1409_s5 = inlined_call_operand.vmem [shape: f32[1,32], index: 5, kind: input, shape index: {}]   ;;  %s1410_s6 = inlined_call_operand.vmem [shape: f32[2,6,16], index: 6, kind: output, shape index: {}]  }
   0x1   :  { %s1234_s23 = smov 0   ;;  %s1236_s24 = smov 0  }
   0x2   :  { %s1238_s25 = smov 0  }
   0x3 LB: > { %s25_s26 = sadd.s32 1, %s1177_s23  ;;  %s28_s27 = sadd.s32 1, %s1181_s24  ;;  %s1185_s25 = sphi %s1238_s25, %s16_s25   ;;  %s1181_s24 = sphi %s1236_s24, %s1414_s24   ;;  %s1177_s23 = sphi %s1234_s23, %s1413_s23   ;;  %s1173_s22 = sphi %s1232_s22, %s1412_s22   ;;  %s1169_s21 = sphi %s1230_s21, %s1411_s21  }
   0x4   : > { %p26_p0 = scmp.ge.s32.totalorder %s25_s26, 3  ;;  %p1012_p1 = scmp.ge.s32.totalorder %s1185_s25, 1 }
   0x5   : > { %p284_p2 = scmp.lt.s32.totalorder %s1185_s25, 7 }
   0x6   : > { %s1416_s26 = smov (%p26_p0, %s25_s26), 0  ;;  %s1418_s27 = smov (!%p26_p0, %s28_s27), %s1181_s24 }
   0x7   : > { %p285_p3 = pnand %p1012_p1, %p284_p2  ;;  %p30_p4 = scmp.ge.s32.totalorder %s1418_s27, 2 }
   0x8   : > { %s334_s28 = smul.u32 (!%p285_p3), 3, %s1173_s22  ;;  %p378_p5 = scmp.lt.s32.totalorder (!%p285_p3), %s1173_s22, 1 }
   0x9   : > { %s1420_s27 = smov (%p30_p4, %s1418_s27), 0  ;;  %288 = sbr.rel (%p285_p3) target bundleno = 1209 (0x4b9), region = 44 }
   0xa   : > { %s1263_s29 = sadd.s32 (!%p285_p3), %s1169_s21, %s334_s28  ;;  %p1018_p8 = scmp.ne.s32.totalorder (!%p285_p3), %s1169_s21, 0 }
   0xb   : > { %p336_p6 = scmp.lt.s32.totalorder (!%p285_p3), %s1263_s29, 4 }
   0xe   : > { %s1422_s22 = smov (!%p378_p5, %s1173_s22), 1 }
   0xf   : > { %s337_s30 = scalar_select %p336_p6, %s1263_s29, 4 }
  0x10   : > { %s1017_s7 = sshll.u32 %s1422_s22, 3 }
  0x11   : > { %s1013_s8 = sshll.u32 %s337_s30, 1  ;;  %s1270_s11 = scalar_lea.vmem %s1410_s6, %s1017_s7 }
  0x12   : > { %p343_p7 = scmp.lt.s32.totalorder %s1013_s8, 8  ;;  %385 = sbr.rel (%p1018_p8) target bundleno = 30 (0x1e), region = 48 }
  0x14   : > { %s1424_s8 = smov (!%p343_p7, %s1013_s8), 8 }
  0x15   : > { %s1014_s12 = sshll.u32 %s1424_s8, 3 }
  0x16   : > { %s346_s15 = scalar_lea.vmem %s1404_s0, %s1014_s12  ;;  %s1278_s18 = scalar_lea.vmem %s1405_s1, %s1014_s12 }
  0x17   : > { %vm386_vm0 = vcmask 122880   ;;  %v1187_v0 = vmov 0.0  }
  0x18   : > { %387 = vst.msk [vmem:[#allocation2] sm:$0x1] %vm386_vm0, %v1187_v0 }
  0x19   : > { %388 = vst.msk [vmem:[#allocation3] sm:$0x1] %vm386_vm0, %v1187_v0 }
  0x1a   : > { %389 = vst.msk [vmem:[#allocation4] sm:$0x1] %vm386_vm0, %v1187_v0 }
  0x1b   : > { %390 = vst.msk [vmem:[#allocation5] sm:$0x1] %vm386_vm0, %v1187_v0 }
  0x1c   : > { %391 = vst.msk [vmem:[#allocation6] sm:$0x1] %vm386_vm0, %v1187_v0 }
  0x1d   : > { %392 = vst.msk [vmem:[#allocation7] sm:$0x1] %vm386_vm0, %v1187_v0 }
  0x1e PF: > { %v396_v1 = vld [vmem:[%s1406_s2 + $0x8] sm:$0xff]  ;;  %v395_v2 = vld [vmem:[%s1406_s2] sm:$0xff]  ;;  %vm401_vm1 = vcmask 130048   ;;  %v436_v5 = vld [vmem:[%s1408_s4 + $0x18] sm:$0xff]  ;;  %vm441_vm2 = vcmask 261120   ;;  %s1023_s20 = sshll.u32 %s1263_s29, 4 }
  0x1f   : > { %v393_v3 = vld [vmem:[%s346_s15] sm:$0xff]  ;;  %422 = vmatpush.msra.mxu0 %v396_v1  ;;  %1043 = vmatpush.msra.mxu3 %v396_v1  ;;  %v394_v4 = vld [vmem:[%s346_s15 + $0x8] sm:$0xff]  ;;  %v435_v6 = vld [vmem:[%s1408_s4 + $0x10] sm:$0xff]  ;;  %s1310_s22 = sadd.s32 16, %s1023_s20  ;;  %s1188_s28 = smov 16  }
  0x20   : > { %460 = vmatpush.msra.mxu1 %v436_v5  ;;  %1045 = vmatpush.msra.mxu2 %v436_v5  ;;  %v434_v7 = vld [vmem:[%s1408_s4 + $0x8] sm:$0xff]  ;;  %v433_v8 = vld [vmem:[%s1408_s4] sm:$0xff]  ;;  %p1024_p9 = scmp.gt.s32.totalorder %s1310_s22, 72 }
  0x21   : > { %423 = vmatpush.msra.mxu0 %v395_v2  ;;  %1044 = vmatpush.msra.mxu3 %v395_v2  ;;  %v1097_v9 = vld [vmem:[%s1407_s3] ss:$0 sm:$0xff]  ;;  %v1320_v32 = vld [vmem:[%s1278_s18 + $0x8] sm:$0xff]  ;;  %s1189_s30 = smov (!%p1024_p9), 16  }
  0x22   : > { %1019 = vmatmul.msk.f32.vlgmr.msra.gmra.mxu0 %vm401_vm1, %v393_v3  ;;  %1020 = vmatmul.msk.f32.vlgmr.msra.gmra.mxu3 %vm401_vm1, %v394_v4  ;;  %v1098_v16 = vld [vmem:[%s1409_s5] ss:$0 sm:$0xff] }
  0x23   : > { %461 = vmatpush.msra.mxu1 %v435_v6  ;;  %1046 = vmatpush.msra.mxu2 %v435_v6  ;;  %v1317_v31 = vld [vmem:[%s1278_s18] sm:$0xff]  ;;  %s1190_s18 = smov (!%p1024_p9), 112  }
  0x25   : > { %462 = vmatpush.msra.mxu1 %v434_v7  ;;  %1047 = vmatpush.msra.mxu2 %v434_v7 }
  0x27   : > { %463 = vmatpush.msra.mxu1 %v433_v8  ;;  %1048 = vmatpush.msra.mxu2 %v433_v8 }
  0x9f   : > { %v425_v10 = vpop.f32.mrf.mxu0 }
  0xa0   : > { %v426_v11 = vadd.f32 %v1097_v9, %v425_v10 }
  0xa2   : > { %v431_v12 = vmax.f32 %v426_v11, 0.0 }
  0xa4   : > { %1021 = vmatmul.msk.f32.vlgmr.msra.gmra.mxu1 %vm441_vm2, %v431_v12 }
  0xa5   : > { %v428_v13 = vpop.f32.mrf.mxu3 }
  0xa6   : > { %v429_v14 = vadd.f32 %v1097_v9, %v428_v13 }
  0xa8   : > { %v432_v15 = vmax.f32 %v429_v14, 0.0 }
  0xaa   : > { %1022 = vmatmul.msk.f32.vlgmr.msra.gmra.mxu2 %vm441_vm2, %v432_v15 }
 0x121   : > { %v465_v17 = vpop.f32.mrf.mxu1 }
 0x122   : > { %v466_v18 = vadd.f32 %v1098_v16, %v465_v17 }
 0x124   : > { %1099 = vtanh.f32 %v466_v18  ;;  %483 = vrot.lane.b32.xlu0 %v466_v18, %s1188_s28 }
 0x12a   : > { %v1100_v19 = vpop.eup %1099 }
 0x12b   : > { %v473_v20 = vsub.f32 0.0, %v1100_v19 }
 0x12d   : > { %v475_v21 = vmul.f32 1.442695, %v473_v20  ;;  %v468_v22 = vpop.f32.mrf.mxu2 }
 0x12e   : > { %v469_v23 = vadd.f32 %v1098_v16, %v468_v22 }
 0x12f   : > { %1101 = vpow2.f32 %v475_v21 }
 0x130   : > { %1103 = vtanh.f32 %v469_v23  ;;  %485 = vrot.lane.b32.xlu0 %v469_v23, %s1188_s28 }
 0x135   : > { %v1102_v24 = vpop.eup %1101 }
 0x136   : > { %v1104_v25 = vpop.eup %1103  ;;  %v1312_v26 = vmul.f32 0.5, %v1102_v24 }
 0x137   : > { %v474_v27 = vsub.f32 0.0, %v1104_v25 }
 0x139   : > { %v477_v28 = vmul.f32 1.442695, %v474_v27 }
 0x13b   : > { %1105 = vpow2.f32 %v477_v28 }
 0x141   : > { %v1106_v29 = vpop.eup %1105 }
 0x142   : > { %v1314_v30 = vmul.f32 0.5, %v1106_v29 }
 0x196   : > { %v484_v33 = vpop.permute.xlu0 %483 }
 0x197   : > { %v1322_v34 = vmul.f32 %v1102_v24, %v484_v33 }
 0x19f   : > { %500 = sbr.rel (%p1024_p9) target bundleno = 799 (0x31f), region = 52 }
 0x1a2   : > { %v486_v35 = vpop.permute.xlu0 %485 }
 0x1a3   : > { %v1324_v36 = vmul.f32 %v1106_v29, %v486_v35 }
 0x1a4   : > { %v502_v37 = vmul.f32 %v1320_v32, %v1320_v32  ;;  %v501_v38 = vmul.f32 %v1317_v31, %v1317_v31  ;;  %541 = vmatpush.msra.mxu0 %v1320_v32  ;;  %v1112_v40 = vpack.i.bf16 %v1322_v34, %v1312_v26  ;;  %v1191_v57 = vmov 1.0   ;;  %v523_v0 = vld [vmem:[#allocation2] sm:$0x1]  ;;  %v550_v1 = vld [vmem:[#allocation3] sm:$0x1] }
 0x1a5   : > { %v1107_v39 = vpack.i.bf16 %v1324_v36, %v1314_v30  ;;  %vm548_vm3 = vcmask 122880   ;;  %v573_v6 = vld [vmem:[#allocation4] sm:$0x1]  ;;  %v604_v7 = vld [vmem:[#allocation5] sm:$0x1] }
 0x1a6   : > { %507 = vrot.lane.b32.xlu0 %v502_v37, %s1189_s30  ;;  %505 = vrot.lane.b32.xlu1 %v501_v38, %s1189_s30  ;;  %v635_v12 = vld [vmem:[#allocation6] sm:$0x1]  ;;  %v666_v13 = vld [vmem:[#allocation7] sm:$0x1] }
 0x1a7   : > { %565 = vmatpush.msra.mxu1 %v502_v37  ;;  %542 = vmatpush.msra.mxu0 %v1317_v31 }
 0x1a8   : > { %1108 = vrot.lane.b32.xlu2 %v1107_v39, %s1190_s18  ;;  %1025 = vmatmul.msk.f32.vlgmr.msra.gmra.mxu0 %vm401_vm1, %v1191_v57 }
 0x1a9   : > { %566 = vmatpush.msra.mxu1 %v501_v38 }
 0x1aa   : > { %1026 = vmatmul.msk.f32.vlgmr.msra.gmra.mxu1 %vm401_vm1, %v1191_v57 }
 0x1ae   : > { %517 = vrot.lane.b32.xlu0 %v1320_v32, %s1189_s30  ;;  %515 = vrot.lane.b32.xlu1 %v1317_v31, %s1189_s30 }
 0x1b0   : > { %1113 = vrot.lane.b32.xlu2 %v1112_v40, %s1190_s18 }
 0x202   : > { %v1109_v51 = vpop.permute.xlu2 %1108 }
 0x203   : > { %v1110_v52 = vunpack.i.l.bf16 %v1109_v51  ;;  %v1111_v53 = vunpack.i.h.bf16 %v1109_v51 }
 0x205   : > { %596 = vmatpush.msra.mxu2 %v1110_v52  ;;  %627 = vmatpush.msra.mxu3 %v1111_v53 }
 0x20a   : > { %v1114_v54 = vpop.permute.xlu2 %1113 }
 0x20b   : > { %v1116_v55 = vunpack.i.h.bf16 %v1114_v54  ;;  %v1115_v56 = vunpack.i.l.bf16 %v1114_v54 }
 0x20d   : > { %597 = vmatpush.msra.mxu2 %v1115_v56  ;;  %628 = vmatpush.msra.mxu3 %v1116_v55 }
 0x20e   : > { %1027 = vmatmul.msk.f32.vlgmr.msra.gmra.mxu2 %vm401_vm1, %v1191_v57  ;;  %1028 = vmatmul.msk.f32.vlgmr.msra.gmra.mxu3 %vm401_vm1, %v1191_v57 }
 0x218   : > { %v508_v41 = vpop.permute.xlu0 %507  ;;  %v506_v42 = vpop.permute.xlu1 %505 }
 0x219   : > { %v512_v45 = vmul.f32 %v508_v41, %v1314_v30  ;;  %v511_v46 = vmul.f32 %v506_v42, %v1312_v26 }
 0x220   : > { %v518_v43 = vpop.permute.xlu0 %517  ;;  %v516_v44 = vpop.permute.xlu1 %515 }
 0x221   : > { %v522_v47 = vmul.f32 %v518_v43, %v1324_v36  ;;  %v521_v48 = vmul.f32 %v516_v44, %v1322_v34 }
 0x223   : > { %v1117_v49 = vpack.i.bf16 %v522_v47, %v512_v45  ;;  %v1122_v50 = vpack.i.bf16 %v521_v48, %v511_v46 }
 0x225   : > { %1118 = vrot.lane.b32.xlu0 %v1117_v49, %s1190_s18  ;;  %1123 = vrot.lane.b32.xlu1 %v1122_v50, %s1190_s18  ;;  %v544_v2 = vpop.f32.mrf.mxu0 }
 0x226   : > { %v547_v4 = vadd.f32 %v544_v2, %v523_v0 }
 0x227   : > { %v568_v3 = vpop.f32.mrf.mxu1 }
 0x228   : > { %v571_v5 = vadd.f32 %v568_v3, %v550_v1  ;;  %549 = vst.msk [vmem:[#allocation2] sm:$0x1] %vm548_vm3, %v547_v4 }
 0x22a   : > { %572 = vst.msk [vmem:[#allocation3] sm:$0x1] %vm548_vm3, %v571_v5 }
 0x291   : > { %v599_v8 = vpop.f32.mrf.mxu2  ;;  %v630_v9 = vpop.f32.mrf.mxu3 }
 0x292   : > { %v602_v10 = vadd.f32 %v599_v8, %v573_v6  ;;  %v633_v11 = vadd.f32 %v630_v9, %v604_v7 }
 0x294   : > { %603 = vst.msk [vmem:[#allocation4] sm:$0x1] %vm548_vm3, %v602_v10 }
 0x295   : > { %634 = vst.msk [vmem:[#allocation5] sm:$0x1] %vm548_vm3, %v633_v11 }
 0x297   : > { %v1119_v58 = vpop.permute.xlu0 %1118  ;;  %v1124_v59 = vpop.permute.xlu1 %1123 }
 0x298   : > { %v1121_v60 = vunpack.i.h.bf16 %v1119_v58  ;;  %v1120_v61 = vunpack.i.l.bf16 %v1119_v58  ;;  %v1126_v62 = vunpack.i.h.bf16 %v1124_v59  ;;  %v1125_v63 = vunpack.i.l.bf16 %v1124_v59 }
 0x29a   : > { %658 = vmatpush.msrb.mxu0 %v1120_v61  ;;  %689 = vmatpush.msrb.mxu1 %v1121_v60 }
 0x29c   : > { %659 = vmatpush.msrb.mxu0 %v1125_v63  ;;  %690 = vmatpush.msrb.mxu1 %v1126_v62 }
 0x29d   : > { %1029 = vmatmul.msk.f32.vlgmr.msrb.gmra.mxu0 %vm401_vm1, %v1191_v57  ;;  %1030 = vmatmul.msk.f32.vlgmr.msrb.gmra.mxu1 %vm401_vm1, %v1191_v57 }
 0x31a   : > { %v661_v14 = vpop.f32.mrf.mxu0  ;;  %v692_v15 = vpop.f32.mrf.mxu1 }
 0x31b   : > { %v664_v16 = vadd.f32 %v661_v14, %v635_v12  ;;  %v695_v17 = vadd.f32 %v692_v15, %v666_v13 }
 0x31d   : > { %665 = vst.msk [vmem:[#allocation6] sm:$0x1] %vm548_vm3, %v664_v16 }
 0x31e   : > { %696 = vst.msk [vmem:[#allocation7] sm:$0x1] %vm548_vm3, %v695_v17 }
 0x31f PF: > { %p1031_p10 = scmp.le.s32.totalorder %s1310_s22, 72 }
 0x320   : > { %s1192_s7 = smov (!%p1031_p10), 16   ;;  %s1193_s29 = smov (!%p1031_p10), 112  }
 0x321   : > { %700 = sbr.rel (%p1031_p10) target bundleno = 1195 (0x4ab), region = 56 }
 0x326   : > { %v701_v18 = vlaneseq  ;;  %v704_v19 = vstv %s1023_s20  ;;  %v1194_v50 = vmov 1.0   ;;  %v741_v57 = vld [vmem:[#allocation2] sm:$0x1]  ;;  %v768_v58 = vld [vmem:[#allocation3] sm:$0x1]  ;;  %vm766_vm6 = vcmask 122880  }
 0x327   : > { %v791_v63 = vld [vmem:[#allocation4] sm:$0x1]  ;;  %v822_v0 = vld [vmem:[#allocation5] sm:$0x1]  ;;  %v853_v5 = vld [vmem:[#allocation6] sm:$0x1] }
 0x328   : > { %v702_v20 = vshrl.u32 %v701_v18, 7  ;;  %v884_v6 = vld [vmem:[#allocation7] sm:$0x1] }
 0x32a   : > { %v705_v21 = vadd.s32 %v704_v19, %v702_v20  ;;  %v703_v22 = vadd.s32 8, %v702_v20 }
 0x32c   : > { %vm707_vm4 = vcmp.lt.s32.totalorder %v705_v21, 72  ;;  %v706_v23 = vadd.s32 %v704_v19, %v703_v22 }
 0x32d   : > { %v713_v24 = vsel %vm707_vm4, %v1317_v31, 0.0  ;;  %v717_v37 = vsel %vm707_vm4, %v1322_v34, 0.0 }
 0x32e   : > { %v719_v25 = vmul.f32 %v713_v24, %v713_v24  ;;  %vm708_vm5 = vcmp.lt.s32.totalorder %v706_v23, 72 }
 0x32f   : > { %v714_v27 = vsel %vm708_vm5, %v1320_v32, 0.0  ;;  %1032 = vmatpush.msk.msra.mxu0 %vm708_vm5, %v1320_v32  ;;  %v716_v29 = vsel %vm708_vm5, %v1314_v30, 0.0  ;;  %v718_v33 = vsel %vm708_vm5, %v1324_v36, 0.0  ;;  %v715_v32 = vsel %vm707_vm4, %v1312_v26, 0.0 }
 0x330   : > { %723 = vrot.lane.b32.xlu1 %v719_v25, %s1192_s7  ;;  %v720_v28 = vmul.f32 %v714_v27, %v714_v27  ;;  %v1127_v35 = vpack.i.bf16 %v718_v33, %v716_v29  ;;  %v1132_v38 = vpack.i.bf16 %v717_v37, %v715_v32 }
 0x331   : > { %1033 = vmatpush.msk.msra.mxu0 %vm707_vm4, %v1317_v31 }
 0x332   : > { %725 = vrot.lane.b32.xlu0 %v720_v28, %s1192_s7  ;;  %783 = vmatpush.msra.mxu1 %v720_v28 }
 0x333   : > { %1128 = vrot.lane.b32.xlu2 %v1127_v35, %s1193_s29  ;;  %1034 = vmatmul.msk.f32.vlgmr.msra.gmra.mxu0 %vm401_vm1, %v1194_v50 }
 0x334   : > { %784 = vmatpush.msra.mxu1 %v719_v25 }
 0x335   : > { %1035 = vmatmul.msk.f32.vlgmr.msra.gmra.mxu1 %vm401_vm1, %v1194_v50 }
 0x338   : > { %733 = vrot.lane.b32.xlu1 %v713_v24, %s1192_s7 }
 0x33a   : > { %735 = vrot.lane.b32.xlu0 %v714_v27, %s1192_s7 }
 0x33b   : > { %1133 = vrot.lane.b32.xlu2 %v1132_v38, %s1193_s29 }
 0x38d   : > { %v1129_v46 = vpop.permute.xlu2 %1128 }
 0x38e   : > { %v1130_v47 = vunpack.i.l.bf16 %v1129_v46  ;;  %v1131_v26 = vunpack.i.h.bf16 %v1129_v46 }
 0x390   : > { %814 = vmatpush.msra.mxu2 %v1130_v47  ;;  %845 = vmatpush.msra.mxu3 %v1131_v26 }
 0x395   : > { %v1134_v34 = vpop.permute.xlu2 %1133 }
 0x396   : > { %v1136_v48 = vunpack.i.h.bf16 %v1134_v34  ;;  %v1135_v49 = vunpack.i.l.bf16 %v1134_v34 }
 0x398   : > { %815 = vmatpush.msra.mxu2 %v1135_v49  ;;  %846 = vmatpush.msra.mxu3 %v1136_v48 }
 0x399   : > { %1036 = vmatmul.msk.f32.vlgmr.msra.gmra.mxu2 %vm401_vm1, %v1194_v50  ;;  %1037 = vmatmul.msk.f32.vlgmr.msra.gmra.mxu3 %vm401_vm1, %v1194_v50 }
 0x3a2   : > { %v724_v31 = vpop.permute.xlu1 %723 }
 0x3a3   : > { %v729_v41 = vmul.f32 %v724_v31, %v715_v32 }
 0x3a4   : > { %v726_v39 = vpop.permute.xlu0 %725 }
 0x3a5   : > { %v730_v30 = vmul.f32 %v726_v39, %v716_v29 }
 0x3aa   : > { %v734_v40 = vpop.permute.xlu1 %733 }
 0x3ab   : > { %v739_v42 = vmul.f32 %v734_v40, %v717_v37 }
 0x3ac   : > { %v736_v43 = vpop.permute.xlu0 %735 }
 0x3ad   : > { %v1142_v44 = vpack.i.bf16 %v739_v42, %v729_v41  ;;  %v740_v36 = vmul.f32 %v736_v43, %v718_v33 }
 0x3af   : > { %v1137_v45 = vpack.i.bf16 %v740_v36, %v730_v30  ;;  %1143 = vrot.lane.b32.xlu1 %v1142_v44, %s1193_s29 }
 0x3b0   : > { %v762_v59 = vpop.f32.mrf.mxu0 }
 0x3b1   : > { %1138 = vrot.lane.b32.xlu0 %v1137_v45, %s1193_s29  ;;  %v765_v61 = vadd.f32 %v762_v59, %v741_v57 }
 0x3b2   : > { %v786_v60 = vpop.f32.mrf.mxu1 }
 0x3b3   : > { %v789_v62 = vadd.f32 %v786_v60, %v768_v58  ;;  %767 = vst.msk [vmem:[#allocation2] sm:$0x1] %vm766_vm6, %v765_v61 }
 0x3b5   : > { %790 = vst.msk [vmem:[#allocation3] sm:$0x1] %vm766_vm6, %v789_v62 }
 0x41c   : > { %v817_v1 = vpop.f32.mrf.mxu2  ;;  %v848_v2 = vpop.f32.mrf.mxu3 }
 0x41d   : > { %v820_v3 = vadd.f32 %v817_v1, %v791_v63  ;;  %v851_v4 = vadd.f32 %v848_v2, %v822_v0 }
 0x41f   : > { %821 = vst.msk [vmem:[#allocation4] sm:$0x1] %vm766_vm6, %v820_v3 }
 0x420   : > { %852 = vst.msk [vmem:[#allocation5] sm:$0x1] %vm766_vm6, %v851_v4 }
 0x421   : > { %v1144_v51 = vpop.permute.xlu1 %1143 }
 0x422   : > { %v1146_v55 = vunpack.i.h.bf16 %v1144_v51  ;;  %v1145_v56 = vunpack.i.l.bf16 %v1144_v51 }
 0x423   : > { %v1139_v52 = vpop.permute.xlu0 %1138 }
 0x424   : > { %v1141_v53 = vunpack.i.h.bf16 %v1139_v52  ;;  %v1140_v54 = vunpack.i.l.bf16 %v1139_v52 }
 0x426   : > { %876 = vmatpush.msrb.mxu0 %v1140_v54  ;;  %907 = vmatpush.msrb.mxu1 %v1141_v53 }
 0x428   : > { %877 = vmatpush.msrb.mxu0 %v1145_v56  ;;  %908 = vmatpush.msrb.mxu1 %v1146_v55 }
 0x429   : > { %1038 = vmatmul.msk.f32.vlgmr.msrb.gmra.mxu0 %vm401_vm1, %v1194_v50  ;;  %1039 = vmatmul.msk.f32.vlgmr.msrb.gmra.mxu1 %vm401_vm1, %v1194_v50 }
 0x4a6   : > { %v879_v7 = vpop.f32.mrf.mxu0  ;;  %v910_v8 = vpop.f32.mrf.mxu1 }
 0x4a7   : > { %v882_v9 = vadd.f32 %v879_v7, %v853_v5  ;;  %v913_v10 = vadd.f32 %v910_v8, %v884_v6 }
 0x4a9   : > { %883 = vst.msk [vmem:[#allocation6] sm:$0x1] %vm766_vm6, %v882_v9 }
 0x4aa   : > { %914 = vst.msk [vmem:[#allocation7] sm:$0x1] %vm766_vm6, %v913_v10 }
 0x4ab PF: > { %p1040_p11 = scmp.ne.s32.totalorder %s1169_s21, 2 }
 0x4ad   : > { %918 = sbr.rel (%p1040_p11) target bundleno = 1209 (0x4b9), region = 60 }
 0x4b2   : > { %v919_v11 = vld [vmem:[#allocation2] sm:$0x1]  ;;  %vm920_vm7 = vcmask 122880   ;;  %v922_v12 = vld [vmem:[#allocation3] sm:$0x1] }
 0x4b3   : > { %921 = vst.msk [vmem:[%s1270_s11] sm:$0x1] %vm920_vm7, %v919_v11  ;;  %v924_v13 = vld [vmem:[#allocation4] sm:$0x1]  ;;  %v926_v14 = vld [vmem:[#allocation5] sm:$0x1] }
 0x4b4   : > { %923 = vst.msk [vmem:[%s1270_s11 + $0x1] sm:$0x1] %vm920_vm7, %v922_v12  ;;  %v928_v15 = vld [vmem:[#allocation6] sm:$0x1]  ;;  %v930_v16 = vld [vmem:[#allocation7] sm:$0x1] }
 0x4b5   : > { %925 = vst.msk [vmem:[%s1270_s11 + $0x2] sm:$0x1] %vm920_vm7, %v924_v13 }
 0x4b6   : > { %927 = vst.msk [vmem:[%s1270_s11 + $0x3] sm:$0x1] %vm920_vm7, %v926_v14 }
 0x4b7   : > { %929 = vst.msk [vmem:[%s1270_s11 + $0x4] sm:$0x1] %vm920_vm7, %v928_v15 }
 0x4b8   : > { %931 = vst.msk [vmem:[%s1270_s11 + $0x5] sm:$0x1] %vm920_vm7, %v930_v16 }
 0x4b9 PF: > { %s16_s25 = sadd.s32 1, %s1185_s25   ;;  %s1411_s21 = smov %s1177_s23 }
 0x4ba   : > { %p13_p12 = scmp.ge.s32.totalorder %s16_s25, 8   ;;  %s1412_s22 = smov %s1181_s24 }
 0x4bb   : > { %s1413_s23 = smov %s1416_s26  ;;  %s1414_s24 = smov %s1420_s27 }
 0x4bc   :  { %15 = sbr.rel (!%p13_p12) target bundleno = 3 (0x3), region = 93 }

// kernel: tpu_custom_call.1
= control target key start
LH: loop header
LB: loop body
LE: loop exit
PB: predicated region body
PF: predicated region fallthrough
CT: control target
= control target key end

     0   :  { %s1230_s21 = smov 0   ;;  %s1232_s22 = smov 0   ;;  %s1404_s0 = inlined_call_operand.vmem [shape: f32[72,16], index: 0, kind: input, shape index: {}]   ;;  %s1405_s1 = inlined_call_operand.vmem [shape: f32[72,16], index: 1, kind: input, shape index: {}]   ;;  %s1406_s2 = inlined_call_operand.vmem [shape: f32[16,32], index: 2, kind: input, shape index: {}]   ;;  %s1407_s3 = inlined_call_operand.vmem [shape: f32[1,32], index: 3, kind: input, shape index: {}]   ;;  %s1408_s4 = inlined_call_operand.vmem [shape: f32[32,32], index: 4, kind: input, shape index: {}]   ;;  %s1409_s5 = inlined_call_operand.vmem [shape: f32[1,32], index: 5, kind: input, shape index: {}]   ;;  %s1410_s6 = inlined_call_operand.vmem [shape: f32[2,6,16], index: 6, kind: output, shape index: {}]  }
   0x1   :  { %s1234_s23 = smov 0   ;;  %s1236_s24 = smov 0  }
   0x2   :  { %s1238_s25 = smov 0  }
   0x3 LB: > { %s25_s26 = sadd.s32 1, %s1177_s23  ;;  %s28_s27 = sadd.s32 1, %s1181_s24  ;;  %s1185_s25 = sphi %s1238_s25, %s16_s25   ;;  %s1181_s24 = sphi %s1236_s24, %s1414_s24   ;;  %s1177_s23 = sphi %s1234_s23, %s1413_s23   ;;  %s1173_s22 = sphi %s1232_s22, %s1412_s22   ;;  %s1169_s21 = sphi %s1230_s21, %s1411_s21  }
   0x4   : > { %p26_p0 = scmp.ge.s32.totalorder %s25_s26, 3  ;;  %p1012_p1 = scmp.ge.s32.totalorder %s1185_s25, 1 }
   0x5   : > { %p284_p2 = scmp.lt.s32.totalorder %s1185_s25, 7 }
   0x6   : > { %s1416_s26 = smov (%p26_p0, %s25_s26), 0  ;;  %s1418_s27 = smov (!%p26_p0, %s28_s27), %s1181_s24 }
   0x7   : > { %p285_p3 = pnand %p1012_p1, %p284_p2  ;;  %p30_p4 = scmp.ge.s32.totalorder %s1418_s27, 2 }
   0x8   : > { %s334_s28 = smul.u32 (!%p285_p3), 3, %s1173_s22  ;;  %p378_p5 = scmp.lt.s32.totalorder (!%p285_p3), %s1173_s22, 1 }
   0x9   : > { %s1420_s27 = smov (%p30_p4, %s1418_s27), 0  ;;  %288 = sbr.rel (%p285_p3) target bundleno = 1209 (0x4b9), region = 44 }
   0xa   : > { %s1263_s29 = sadd.s32 (!%p285_p3), %s1169_s21, %s334_s28  ;;  %p1018_p8 = scmp.ne.s32.totalorder (!%p285_p3), %s1169_s21, 0 }
   0xb   : > { %p336_p6 = scmp.lt.s32.totalorder (!%p285_p3), %s1263_s29, 4 }
   0xe   : > { %s1422_s22 = smov (!%p378_p5, %s1173_s22), 1 }
   0xf   : > { %s337_s30 = scalar_select %p336_p6, %s1263_s29, 4 }
  0x10   : > { %s1017_s7 = sshll.u32 %s1422_s22, 3 }
  0x11   : > { %s1013_s8 = sshll.u32 %s337_s30, 1  ;;  %s1270_s11 = scalar_lea.vmem %s1410_s6, %s1017_s7 }
  0x12   : > { %p343_p7 = scmp.lt.s32.totalorder %s1013_s8, 8  ;;  %385 = sbr.rel (%p1018_p8) target bundleno = 30 (0x1e), region = 48 }
  0x14   : > { %s1424_s8 = smov (!%p343_p7, %s1013_s8), 8 }
  0x15   : > { %s1014_s12 = sshll.u32 %s1424_s8, 3 }
  0x16   : > { %s346_s15 = scalar_lea.vmem %s1404_s0, %s1014_s12  ;;  %s1278_s18 = scalar_lea.vmem %s1405_s1, %s1014_s12 }
  0x17   : > { %vm386_vm0 = vcmask 122880   ;;  %v1187_v0 = vmov 0.0  }
  0x18   : > { %387 = vst.msk [vmem:[#allocation2] sm:$0x1] %vm386_vm0, %v1187_v0 }
  0x19   : > { %388 = vst.msk [vmem:[#allocation3] sm:$0x1] %vm386_vm0, %v1187_v0 }
  0x1a   : > { %389 = vst.msk [vmem:[#allocation4] sm:$0x1] %vm386_vm0, %v1187_v0 }
  0x1b   : > { %390 = vst.msk [vmem:[#allocation5] sm:$0x1] %vm386_vm0, %v1187_v0 }
  0x1c   : > { %391 = vst.msk [vmem:[#allocation6] sm:$0x1] %vm386_vm0, %v1187_v0 }
  0x1d   : > { %392 = vst.msk [vmem:[#allocation7] sm:$0x1] %vm386_vm0, %v1187_v0 }
  0x1e PF: > { %v396_v1 = vld [vmem:[%s1406_s2 + $0x8] sm:$0xff]  ;;  %v395_v2 = vld [vmem:[%s1406_s2] sm:$0xff]  ;;  %vm401_vm1 = vcmask 130048   ;;  %v436_v5 = vld [vmem:[%s1408_s4 + $0x18] sm:$0xff]  ;;  %vm441_vm2 = vcmask 261120   ;;  %s1023_s20 = sshll.u32 %s1263_s29, 4 }
  0x1f   : > { %v393_v3 = vld [vmem:[%s346_s15] sm:$0xff]  ;;  %422 = vmatpush.msra.mxu0 %v396_v1  ;;  %1043 = vmatpush.msra.mxu3 %v396_v1  ;;  %v394_v4 = vld [vmem:[%s346_s15 + $0x8] sm:$0xff]  ;;  %v435_v6 = vld [vmem:[%s1408_s4 + $0x10] sm:$0xff]  ;;  %s1310_s22 = sadd.s32 16, %s1023_s20  ;;  %s1188_s28 = smov 16  }
  0x20   : > { %460 = vmatpush.msra.mxu1 %v436_v5  ;;  %1045 = vmatpush.msra.mxu2 %v436_v5  ;;  %v434_v7 = vld [vmem:[%s1408_s4 + $0x8] sm:$0xff]  ;;  %v433_v8 = vld [vmem:[%s1408_s4] sm:$0xff]  ;;  %p1024_p9 = scmp.gt.s32.totalorder %s1310_s22, 72 }
  0x21   : > { %423 = vmatpush.msra.mxu0 %v395_v2  ;;  %1044 = vmatpush.msra.mxu3 %v395_v2  ;;  %v1097_v9 = vld [vmem:[%s1407_s3] ss:$0 sm:$0xff]  ;;  %v1320_v32 = vld [vmem:[%s1278_s18 + $0x8] sm:$0xff]  ;;  %s1189_s30 = smov (!%p1024_p9), 16  }
  0x22   : > { %1019 = vmatmul.msk.f32.vlgmr.msra.gmra.mxu0 %vm401_vm1, %v393_v3  ;;  %1020 = vmatmul.msk.f32.vlgmr.msra.gmra.mxu3 %vm401_vm1, %v394_v4  ;;  %v1098_v16 = vld [vmem:[%s1409_s5] ss:$0 sm:$0xff] }
  0x23   : > { %461 = vmatpush.msra.mxu1 %v435_v6  ;;  %1046 = vmatpush.msra.mxu2 %v435_v6  ;;  %v1317_v31 = vld [vmem:[%s1278_s18] sm:$0xff]  ;;  %s1190_s18 = smov (!%p1024_p9), 112  }
  0x25   : > { %462 = vmatpush.msra.mxu1 %v434_v7  ;;  %1047 = vmatpush.msra.mxu2 %v434_v7 }
  0x27   : > { %463 = vmatpush.msra.mxu1 %v433_v8  ;;  %1048 = vmatpush.msra.mxu2 %v433_v8 }
  0x9f   : > { %v425_v10 = vpop.f32.mrf.mxu0 }
  0xa0   : > { %v426_v11 = vadd.f32 %v1097_v9, %v425_v10 }
  0xa2   : > { %v431_v12 = vmax.f32 %v426_v11, 0.0 }
  0xa4   : > { %1021 = vmatmul.msk.f32.vlgmr.msra.gmra.mxu1 %vm441_vm2, %v431_v12 }
  0xa5   : > { %v428_v13 = vpop.f32.mrf.mxu3 }
  0xa6   : > { %v429_v14 = vadd.f32 %v1097_v9, %v428_v13 }
  0xa8   : > { %v432_v15 = vmax.f32 %v429_v14, 0.0 }
  0xaa   : > { %1022 = vmatmul.msk.f32.vlgmr.msra.gmra.mxu2 %vm441_vm2, %v432_v15 }
 0x121   : > { %v465_v17 = vpop.f32.mrf.mxu1 }
 0x122   : > { %v466_v18 = vadd.f32 %v1098_v16, %v465_v17 }
 0x124   : > { %1099 = vtanh.f32 %v466_v18  ;;  %483 = vrot.lane.b32.xlu0 %v466_v18, %s1188_s28 }
 0x12a   : > { %v1100_v19 = vpop.eup %1099 }
 0x12b   : > { %v473_v20 = vsub.f32 0.0, %v1100_v19 }
 0x12d   : > { %v475_v21 = vmul.f32 1.442695, %v473_v20  ;;  %v468_v22 = vpop.f32.mrf.mxu2 }
 0x12e   : > { %v469_v23 = vadd.f32 %v1098_v16, %v468_v22 }
 0x12f   : > { %1101 = vpow2.f32 %v475_v21 }
 0x130   : > { %1103 = vtanh.f32 %v469_v23  ;;  %485 = vrot.lane.b32.xlu0 %v469_v23, %s1188_s28 }
 0x135   : > { %v1102_v24 = vpop.eup %1101 }
 0x136   : > { %v1104_v25 = vpop.eup %1103  ;;  %v1312_v26 = vmul.f32 0.5, %v1102_v24 }
 0x137   : > { %v474_v27 = vsub.f32 0.0, %v1104_v25 }
 0x139   : > { %v477_v28 = vmul.f32 1.442695, %v474_v27 }
 0x13b   : > { %1105 = vpow2.f32 %v477_v28 }
 0x141   : > { %v1106_v29 = vpop.eup %1105 }
 0x142   : > { %v1314_v30 = vmul.f32 0.5, %v1106_v29 }
 0x196   : > { %v484_v33 = vpop.permute.xlu0 %483 }
 0x197   : > { %v1322_v34 = vmul.f32 %v1102_v24, %v484_v33 }
 0x19f   : > { %500 = sbr.rel (%p1024_p9) target bundleno = 799 (0x31f), region = 52 }
 0x1a2   : > { %v486_v35 = vpop.permute.xlu0 %485 }
 0x1a3   : > { %v1324_v36 = vmul.f32 %v1106_v29, %v486_v35 }
 0x1a4   : > { %v502_v37 = vmul.f32 %v1320_v32, %v1320_v32  ;;  %v501_v38 = vmul.f32 %v1317_v31, %v1317_v31  ;;  %541 = vmatpush.msra.mxu0 %v1320_v32  ;;  %v1112_v40 = vpack.i.bf16 %v1322_v34, %v1312_v26  ;;  %v1191_v57 = vmov 1.0   ;;  %v523_v0 = vld [vmem:[#allocation2] sm:$0x1]  ;;  %v550_v1 = vld [vmem:[#allocation3] sm:$0x1] }
 0x1a5   : > { %v1107_v39 = vpack.i.bf16 %v1324_v36, %v1314_v30  ;;  %vm548_vm3 = vcmask 122880   ;;  %v573_v6 = vld [vmem:[#allocation4] sm:$0x1]  ;;  %v604_v7 = vld [vmem:[#allocation5] sm:$0x1] }
 0x1a6   : > { %507 = vrot.lane.b32.xlu0 %v502_v37, %s1189_s30  ;;  %505 = vrot.lane.b32.xlu1 %v501_v38, %s1189_s30  ;;  %v635_v12 = vld [vmem:[#allocation6] sm:$0x1]  ;;  %v666_v13 = vld [vmem:[#allocation7] sm:$0x1] }
 0x1a7   : > { %565 = vmatpush.msra.mxu1 %v502_v37  ;;  %542 = vmatpush.msra.mxu0 %v1317_v31 }
 0x1a8   : > { %1108 = vrot.lane.b32.xlu2 %v1107_v39, %s1190_s18  ;;  %1025 = vmatmul.msk.f32.vlgmr.msra.gmra.mxu0 %vm401_vm1, %v1191_v57 }
 0x1a9   : > { %566 = vmatpush.msra.mxu1 %v501_v38 }
 0x1aa   : > { %1026 = vmatmul.msk.f32.vlgmr.msra.gmra.mxu1 %vm401_vm1, %v1191_v57 }
 0x1ae   : > { %517 = vrot.lane.b32.xlu0 %v1320_v32, %s1189_s30  ;;  %515 = vrot.lane.b32.xlu1 %v1317_v31, %s1189_s30 }
 0x1b0   : > { %1113 = vrot.lane.b32.xlu2 %v1112_v40, %s1190_s18 }
 0x202   : > { %v1109_v51 = vpop.permute.xlu2 %1108 }
 0x203   : > { %v1110_v52 = vunpack.i.l.bf16 %v1109_v51  ;;  %v1111_v53 = vunpack.i.h.bf16 %v1109_v51 }
 0x205   : > { %596 = vmatpush.msra.mxu2 %v1110_v52  ;;  %627 = vmatpush.msra.mxu3 %v1111_v53 }
 0x20a   : > { %v1114_v54 = vpop.permute.xlu2 %1113 }
 0x20b   : > { %v1116_v55 = vunpack.i.h.bf16 %v1114_v54  ;;  %v1115_v56 = vunpack.i.l.bf16 %v1114_v54 }
 0x20d   : > { %597 = vmatpush.msra.mxu2 %v1115_v56  ;;  %628 = vmatpush.msra.mxu3 %v1116_v55 }
 0x20e   : > { %1027 = vmatmul.msk.f32.vlgmr.msra.gmra.mxu2 %vm401_vm1, %v1191_v57  ;;  %1028 = vmatmul.msk.f32.vlgmr.msra.gmra.mxu3 %vm401_vm1, %v1191_v57 }
 0x218   : > { %v508_v41 = vpop.permute.xlu0 %507  ;;  %v506_v42 = vpop.permute.xlu1 %505 }
 0x219   : > { %v512_v45 = vmul.f32 %v508_v41, %v1314_v30  ;;  %v511_v46 = vmul.f32 %v506_v42, %v1312_v26 }
 0x220   : > { %v518_v43 = vpop.permute.xlu0 %517  ;;  %v516_v44 = vpop.permute.xlu1 %515 }
 0x221   : > { %v522_v47 = vmul.f32 %v518_v43, %v1324_v36  ;;  %v521_v48 = vmul.f32 %v516_v44, %v1322_v34 }
 0x223   : > { %v1117_v49 = vpack.i.bf16 %v522_v47, %v512_v45  ;;  %v1122_v50 = vpack.i.bf16 %v521_v48, %v511_v46 }
 0x225   : > { %1118 = vrot.lane.b32.xlu0 %v1117_v49, %s1190_s18  ;;  %1123 = vrot.lane.b32.xlu1 %v1122_v50, %s1190_s18  ;;  %v544_v2 = vpop.f32.mrf.mxu0 }
 0x226   : > { %v547_v4 = vadd.f32 %v544_v2, %v523_v0 }
 0x227   : > { %v568_v3 = vpop.f32.mrf.mxu1 }
 0x228   : > { %v571_v5 = vadd.f32 %v568_v3, %v550_v1  ;;  %549 = vst.msk [vmem:[#allocation2] sm:$0x1] %vm548_vm3, %v547_v4 }
 0x22a   : > { %572 = vst.msk [vmem:[#allocation3] sm:$0x1] %vm548_vm3, %v571_v5 }
 0x291   : > { %v599_v8 = vpop.f32.mrf.mxu2  ;;  %v630_v9 = vpop.f32.mrf.mxu3 }
 0x292   : > { %v602_v10 = vadd.f32 %v599_v8, %v573_v6  ;;  %v633_v11 = vadd.f32 %v630_v9, %v604_v7 }
 0x294   : > { %603 = vst.msk [vmem:[#allocation4] sm:$0x1] %vm548_vm3, %v602_v10 }
 0x295   : > { %634 = vst.msk [vmem:[#allocation5] sm:$0x1] %vm548_vm3, %v633_v11 }
 0x297   : > { %v1119_v58 = vpop.permute.xlu0 %1118  ;;  %v1124_v59 = vpop.permute.xlu1 %1123 }
 0x298   : > { %v1121_v60 = vunpack.i.h.bf16 %v1119_v58  ;;  %v1120_v61 = vunpack.i.l.bf16 %v1119_v58  ;;  %v1126_v62 = vunpack.i.h.bf16 %v1124_v59  ;;  %v1125_v63 = vunpack.i.l.bf16 %v1124_v59 }
 0x29a   : > { %658 = vmatpush.msrb.mxu0 %v1120_v61  ;;  %689 = vmatpush.msrb.mxu1 %v1121_v60 }
 0x29c   : > { %659 = vmatpush.msrb.mxu0 %v1125_v63  ;;  %690 = vmatpush.msrb.mxu1 %v1126_v62 }
 0x29d   : > { %1029 = vmatmul.msk.f32.vlgmr.msrb.gmra.mxu0 %vm401_vm1, %v1191_v57  ;;  %1030 = vmatmul.msk.f32.vlgmr.msrb.gmra.mxu1 %vm401_vm1, %v1191_v57 }
 0x31a   : > { %v661_v14 = vpop.f32.mrf.mxu0  ;;  %v692_v15 = vpop.f32.mrf.mxu1 }
 0x31b   : > { %v664_v16 = vadd.f32 %v661_v14, %v635_v12  ;;  %v695_v17 = vadd.f32 %v692_v15, %v666_v13 }
 0x31d   : > { %665 = vst.msk [vmem:[#allocation6] sm:$0x1] %vm548_vm3, %v664_v16 }
 0x31e   : > { %696 = vst.msk [vmem:[#allocation7] sm:$0x1] %vm548_vm3, %v695_v17 }
 0x31f PF: > { %p1031_p10 = scmp.le.s32.totalorder %s1310_s22, 72 }
 0x320   : > { %s1192_s7 = smov (!%p1031_p10), 16   ;;  %s1193_s29 = smov (!%p1031_p10), 112  }
 0x321   : > { %700 = sbr.rel (%p1031_p10) target bundleno = 1195 (0x4ab), region = 56 }
 0x326   : > { %v701_v18 = vlaneseq  ;;  %v704_v19 = vstv %s1023_s20  ;;  %v1194_v50 = vmov 1.0   ;;  %v741_v57 = vld [vmem:[#allocation2] sm:$0x1]  ;;  %v768_v58 = vld [vmem:[#allocation3] sm:$0x1]  ;;  %vm766_vm6 = vcmask 122880  }
 0x327   : > { %v791_v63 = vld [vmem:[#allocation4] sm:$0x1]  ;;  %v822_v0 = vld [vmem:[#allocation5] sm:$0x1]  ;;  %v853_v5 = vld [vmem:[#allocation6] sm:$0x1] }
 0x328   : > { %v702_v20 = vshrl.u32 %v701_v18, 7  ;;  %v884_v6 = vld [vmem:[#allocation7] sm:$0x1] }
 0x32a   : > { %v705_v21 = vadd.s32 %v704_v19, %v702_v20  ;;  %v703_v22 = vadd.s32 8, %v702_v20 }
 0x32c   : > { %vm707_vm4 = vcmp.lt.s32.totalorder %v705_v21, 72  ;;  %v706_v23 = vadd.s32 %v704_v19, %v703_v22 }
 0x32d   : > { %v713_v24 = vsel %vm707_vm4, %v1317_v31, 0.0  ;;  %v717_v37 = vsel %vm707_vm4, %v1322_v34, 0.0 }
 0x32e   : > { %v719_v25 = vmul.f32 %v713_v24, %v713_v24  ;;  %vm708_vm5 = vcmp.lt.s32.totalorder %v706_v23, 72 }
 0x32f   : > { %v714_v27 = vsel %vm708_vm5, %v1320_v32, 0.0  ;;  %1032 = vmatpush.msk.msra.mxu0 %vm708_vm5, %v1320_v32  ;;  %v716_v29 = vsel %vm708_vm5, %v1314_v30, 0.0  ;;  %v718_v33 = vsel %vm708_vm5, %v1324_v36, 0.0  ;;  %v715_v32 = vsel %vm707_vm4, %v1312_v26, 0.0 }
 0x330   : > { %723 = vrot.lane.b32.xlu1 %v719_v25, %s1192_s7  ;;  %v720_v28 = vmul.f32 %v714_v27, %v714_v27  ;;  %v1127_v35 = vpack.i.bf16 %v718_v33, %v716_v29  ;;  %v1132_v38 = vpack.i.bf16 %v717_v37, %v715_v32 }
 0x331   : > { %1033 = vmatpush.msk.msra.mxu0 %vm707_vm4, %v1317_v31 }
 0x332   : > { %725 = vrot.lane.b32.xlu0 %v720_v28, %s1192_s7  ;;  %783 = vmatpush.msra.mxu1 %v720_v28 }
 0x333   : > { %1128 = vrot.lane.b32.xlu2 %v1127_v35, %s1193_s29  ;;  %1034 = vmatmul.msk.f32.vlgmr.msra.gmra.mxu0 %vm401_vm1, %v1194_v50 }
 0x334   : > { %784 = vmatpush.msra.mxu1 %v719_v25 }
 0x335   : > { %1035 = vmatmul.msk.f32.vlgmr.msra.gmra.mxu1 %vm401_vm1, %v1194_v50 }
 0x338   : > { %733 = vrot.lane.b32.xlu1 %v713_v24, %s1192_s7 }
 0x33a   : > { %735 = vrot.lane.b32.xlu0 %v714_v27, %s1192_s7 }
 0x33b   : > { %1133 = vrot.lane.b32.xlu2 %v1132_v38, %s1193_s29 }
 0x38d   : > { %v1129_v46 = vpop.permute.xlu2 %1128 }
 0x38e   : > { %v1130_v47 = vunpack.i.l.bf16 %v1129_v46  ;;  %v1131_v26 = vunpack.i.h.bf16 %v1129_v46 }
 0x390   : > { %814 = vmatpush.msra.mxu2 %v1130_v47  ;;  %845 = vmatpush.msra.mxu3 %v1131_v26 }
 0x395   : > { %v1134_v34 = vpop.permute.xlu2 %1133 }
 0x396   : > { %v1136_v48 = vunpack.i.h.bf16 %v1134_v34  ;;  %v1135_v49 = vunpack.i.l.bf16 %v1134_v34 }
 0x398   : > { %815 = vmatpush.msra.mxu2 %v1135_v49  ;;  %846 = vmatpush.msra.mxu3 %v1136_v48 }
 0x399   : > { %1036 = vmatmul.msk.f32.vlgmr.msra.gmra.mxu2 %vm401_vm1, %v1194_v50  ;;  %1037 = vmatmul.msk.f32.vlgmr.msra.gmra.mxu3 %vm401_vm1, %v1194_v50 }
 0x3a2   : > { %v724_v31 = vpop.permute.xlu1 %723 }
 0x3a3   : > { %v729_v41 = vmul.f32 %v724_v31, %v715_v32 }
 0x3a4   : > { %v726_v39 = vpop.permute.xlu0 %725 }
 0x3a5   : > { %v730_v30 = vmul.f32 %v726_v39, %v716_v29 }
 0x3aa   : > { %v734_v40 = vpop.permute.xlu1 %733 }
 0x3ab   : > { %v739_v42 = vmul.f32 %v734_v40, %v717_v37 }
 0x3ac   : > { %v736_v43 = vpop.permute.xlu0 %735 }
 0x3ad   : > { %v1142_v44 = vpack.i.bf16 %v739_v42, %v729_v41  ;;  %v740_v36 = vmul.f32 %v736_v43, %v718_v33 }
 0x3af   : > { %v1137_v45 = vpack.i.bf16 %v740_v36, %v730_v30  ;;  %1143 = vrot.lane.b32.xlu1 %v1142_v44, %s1193_s29 }
 0x3b0   : > { %v762_v59 = vpop.f32.mrf.mxu0 }
 0x3b1   : > { %1138 = vrot.lane.b32.xlu0 %v1137_v45, %s1193_s29  ;;  %v765_v61 = vadd.f32 %v762_v59, %v741_v57 }
 0x3b2   : > { %v786_v60 = vpop.f32.mrf.mxu1 }
 0x3b3   : > { %v789_v62 = vadd.f32 %v786_v60, %v768_v58  ;;  %767 = vst.msk [vmem:[#allocation2] sm:$0x1] %vm766_vm6, %v765_v61 }
 0x3b5   : > { %790 = vst.msk [vmem:[#allocation3] sm:$0x1] %vm766_vm6, %v789_v62 }
 0x41c   : > { %v817_v1 = vpop.f32.mrf.mxu2  ;;  %v848_v2 = vpop.f32.mrf.mxu3 }
 0x41d   : > { %v820_v3 = vadd.f32 %v817_v1, %v791_v63  ;;  %v851_v4 = vadd.f32 %v848_v2, %v822_v0 }
 0x41f   : > { %821 = vst.msk [vmem:[#allocation4] sm:$0x1] %vm766_vm6, %v820_v3 }
 0x420   : > { %852 = vst.msk [vmem:[#allocation5] sm:$0x1] %vm766_vm6, %v851_v4 }
 0x421   : > { %v1144_v51 = vpop.permute.xlu1 %1143 }
 0x422   : > { %v1146_v55 = vunpack.i.h.bf16 %v1144_v51  ;;  %v1145_v56 = vunpack.i.l.bf16 %v1144_v51 }
 0x423   : > { %v1139_v52 = vpop.permute.xlu0 %1138 }
 0x424   : > { %v1141_v53 = vunpack.i.h.bf16 %v1139_v52  ;;  %v1140_v54 = vunpack.i.l.bf16 %v1139_v52 }
 0x426   : > { %876 = vmatpush.msrb.mxu0 %v1140_v54  ;;  %907 = vmatpush.msrb.mxu1 %v1141_v53 }
 0x428   : > { %877 = vmatpush.msrb.mxu0 %v1145_v56  ;;  %908 = vmatpush.msrb.mxu1 %v1146_v55 }
 0x429   : > { %1038 = vmatmul.msk.f32.vlgmr.msrb.gmra.mxu0 %vm401_vm1, %v1194_v50  ;;  %1039 = vmatmul.msk.f32.vlgmr.msrb.gmra.mxu1 %vm401_vm1, %v1194_v50 }
 0x4a6   : > { %v879_v7 = vpop.f32.mrf.mxu0  ;;  %v910_v8 = vpop.f32.mrf.mxu1 }
 0x4a7   : > { %v882_v9 = vadd.f32 %v879_v7, %v853_v5  ;;  %v913_v10 = vadd.f32 %v910_v8, %v884_v6 }
 0x4a9   : > { %883 = vst.msk [vmem:[#allocation6] sm:$0x1] %vm766_vm6, %v882_v9 }
 0x4aa   : > { %914 = vst.msk [vmem:[#allocation7] sm:$0x1] %vm766_vm6, %v913_v10 }
 0x4ab PF: > { %p1040_p11 = scmp.ne.s32.totalorder %s1169_s21, 2 }
 0x4ad   : > { %918 = sbr.rel (%p1040_p11) target bundleno = 1209 (0x4b9), region = 60 }
 0x4b2   : > { %v919_v11 = vld [vmem:[#allocation2] sm:$0x1]  ;;  %vm920_vm7 = vcmask 122880   ;;  %v922_v12 = vld [vmem:[#allocation3] sm:$0x1] }
 0x4b3   : > { %921 = vst.msk [vmem:[%s1270_s11] sm:$0x1] %vm920_vm7, %v919_v11  ;;  %v924_v13 = vld [vmem:[#allocation4] sm:$0x1]  ;;  %v926_v14 = vld [vmem:[#allocation5] sm:$0x1] }
 0x4b4   : > { %923 = vst.msk [vmem:[%s1270_s11 + $0x1] sm:$0x1] %vm920_vm7, %v922_v12  ;;  %v928_v15 = vld [vmem:[#allocation6] sm:$0x1]  ;;  %v930_v16 = vld [vmem:[#allocation7] sm:$0x1] }
 0x4b5   : > { %925 = vst.msk [vmem:[%s1270_s11 + $0x2] sm:$0x1] %vm920_vm7, %v924_v13 }
 0x4b6   : > { %927 = vst.msk [vmem:[%s1270_s11 + $0x3] sm:$0x1] %vm920_vm7, %v926_v14 }
 0x4b7   : > { %929 = vst.msk [vmem:[%s1270_s11 + $0x4] sm:$0x1] %vm920_vm7, %v928_v15 }
 0x4b8   : > { %931 = vst.msk [vmem:[%s1270_s11 + $0x5] sm:$0x1] %vm920_vm7, %v930_v16 }
 0x4b9 PF: > { %s16_s25 = sadd.s32 1, %s1185_s25   ;;  %s1411_s21 = smov %s1177_s23 }
 0x4ba   : > { %p13_p12 = scmp.ge.s32.totalorder %s16_s25, 8   ;;  %s1412_s22 = smov %s1181_s24 }
 0x4bb   : > { %s1413_s23 = smov %s1416_s26  ;;  %s1414_s24 = smov %s1420_s27 }
 0x4bc   :  { %15 = sbr.rel (!%p13_p12) target bundleno = 3 (0x3), region = 93 }

</bundles_post_ra>
